<compile_context>
chip_gen: v5e
topology: v5e:2x2
jax: 0.10.0
libtpu: 0.0.40
codegen_flags: <defaults>
</compile_context>

<pallas_src>
import jax
import jax.numpy as jnp
from jax.experimental import pallas as pl
from jax.experimental.pallas import tpu as pltpu

ndf = 8            # the PyTorch module reads a global `ndf`; small deterministic config
NC_IN = 64         # Conv1d(64, ndf, ...) -> 64 input channels
L_IN = 64          # input length so the final conv (k=4, s=1, p=0) sees L=4
N_BATCH = 2
BN_EPS = 1e-5
LRELU_SLOPE = 0.2
K = 4

_L1, _L2, _L3, _L4 = L_IN // 2, L_IN // 4, L_IN // 8, L_IN // 16   # 32, 16, 8, 4


# ---------------------------------------------------------------------------
# In-kernel helpers (all value ops: slices, concats, iota, matmuls, reductions)
# ---------------------------------------------------------------------------
def _leaky(y):
    return jnp.where(y > 0, y, LRELU_SLOPE * y)


def _select_matrix(n_batch, l_in, l_out, d, pad_out):
    """Constant 0/1 matrix picking the stride-2 conv outputs out of the dense
    (stride-1) outputs; if pad_out it also lays them out directly as the next
    layer's zero-padded, batch-stacked input rows (block-diagonal over examples)."""
    rows_per = (l_out + 2) if pad_out else l_out
    r = jax.lax.broadcasted_iota(jnp.int32, (rows_per, d), 0)
    q = jax.lax.broadcasted_iota(jnp.int32, (rows_per, d), 1)
    if pad_out:
        p = r - 1                               # rows 0 and l_out+1 stay all-zero (padding)
        valid = (p >= 0) & (p < l_out)
    else:
        p = r
        valid = p < l_out
    blocks = []
    for n in range(n_batch):                    # no integer div/mod needed: unroll examples
        tgt = n * (l_in + 2) + 2 * p            # dense window index of (example n, position p)
        blocks.append(jnp.where(valid & (q == tgt), 1.0, 0.0).astype(jnp.float32))
    return jnp.concatenate(blocks, axis=0)


def _conv_down(h_pad, w_flat, n_batch, l_in, pad_out):
    """Conv1d(k=4, stride=2, pad=1) over all examples at once.

    h_pad : (n_batch*(l_in+2), c_in) zero-padded, batch-stacked, position-major rows.
    w_flat: (K*c_in, c_out) with row index k*c_in + c_in_idx (matches im2col lane order).
    Returns (n_batch*(l_out+2), c_out) padded rows if pad_out else (n_batch*l_out, c_out).
    """
    d = h_pad.shape[0] - (K - 1)                # number of dense (stride-1) window positions
    # Tap fusion: contiguous row-shifted copies concatenated along lanes -> one matmul.
    im2col = jnp.concatenate([h_pad[k:k + d, :] for k in range(K)], axis=1)
    y_dense = jnp.dot(im2col, w_flat, preferred_element_type=jnp.float32)
    sel = _select_matrix(n_batch, l_in, l_in // 2, d, pad_out)
    return jnp.dot(sel, y_dense, preferred_element_type=jnp.float32)


def _bn_lrelu(y, gamma, beta, n_batch, l_out, padded):
    """BatchNorm1d (training-mode batch stats, biased variance) + LeakyReLU on
    batch-stacked rows.  Zero pad rows do not perturb the sums; after the affine
    they are re-zeroed so the next conv still sees zero padding."""
    inv_cnt = 1.0 / float(n_batch * l_out)
    mean = jnp.sum(y, axis=0, keepdims=True) * inv_cnt
    var = jnp.sum(y * y, axis=0, keepdims=True) * inv_cnt - mean * mean
    var = jnp.maximum(var, 0.0)                 # guard E[x^2]-E[x]^2 cancellation
    scale = gamma * jax.lax.rsqrt(var + BN_EPS)
    shift = beta - mean * scale
    out = _leaky(y * scale + shift)
    if padded:
        r = jax.lax.broadcasted_iota(jnp.int32, (l_out + 2, 1), 0)
        keep = ((r >= 1) & (r <= l_out)).astype(jnp.float32)
        out = out * jnp.concatenate([keep] * n_batch, axis=0)
    return out


# ---------------------------------------------------------------------------
# Fused Pallas kernel
# ---------------------------------------------------------------------------
def _disc_kernel(x_ref, w1_ref, w2_ref, g2_ref, b2_ref, w3_ref, g3_ref, b3_ref,
                 w4_ref, g4_ref, b4_ref, w5_ref, o_ref):
    x = x_ref[...]                                              # (N, 64, 64) NCL
    zrow = jnp.zeros((1, NC_IN), jnp.float32)
    blocks = []
    for n in range(N_BATCH):                                    # NCL -> padded NLC rows in-kernel
        blocks.extend([zrow, x[n].T, zrow])
    h = jnp.concatenate(blocks, axis=0)                         # (N*(L+2), 64)

    # layer 1: Conv1d(64 -> ndf, 4, 2, 1) + LeakyReLU  (LeakyReLU(0)=0 keeps pad rows zero)
    h = _leaky(_conv_down(h, w1_ref[...], N_BATCH, L_IN, pad_out=True))

    # layers 2-4: Conv1d + BatchNorm1d(batch stats) + LeakyReLU
    h = _bn_lrelu(_conv_down(h, w2_ref[...], N_BATCH, _L1, pad_out=True),
                  g2_ref[...], b2_ref[...], N_BATCH, _L2, padded=True)
    h = _bn_lrelu(_conv_down(h, w3_ref[...], N_BATCH, _L2, pad_out=True),
                  g3_ref[...], b3_ref[...], N_BATCH, _L3, padded=True)
    h = _bn_lrelu(_conv_down(h, w4_ref[...], N_BATCH, _L3, pad_out=False),
                  g4_ref[...], b4_ref[...], N_BATCH, _L4, padded=False)     # (N*4, ndf*8)

    # layer 5: Conv1d(ndf*8 -> 1, 4, 1, 0) + Sigmoid, done on the VPU (no MXU round trip)
    w5 = w5_ref[...]                                            # (K, ndf*8)
    prod = h * jnp.concatenate([w5] * N_BATCH, axis=0)          # (N*4, ndf*8)
    logits = []
    for n in range(N_BATCH):
        pn = prod[n * K:(n + 1) * K, :]
        logits.append(jnp.sum(jnp.sum(pn, axis=1, keepdims=True), axis=0, keepdims=True))
    o_ref[...] = jax.nn.sigmoid(jnp.concatenate(logits, axis=0))            # (N, 1)


# ---------------------------------------------------------------------------
# Wrapper
# ---------------------------------------------------------------------------
def prepare_params(params):
    """One-time weight relayouts, kept out of the jitted forward."""
    def flat(w):   # PyTorch Conv1d (C_out, C_in, K) -> (K*C_in, C_out), row = k*C_in + c_in
        c_out, c_in, k = w.shape
        return jnp.transpose(w, (2, 1, 0)).reshape(k * c_in, c_out)
    return {
        "w1": flat(params["w1"]),
        "w2": flat(params["w2"]),
        "g2": params["g2"].reshape(1, -1), "b2": params["b2"].reshape(1, -1),
        "w3": flat(params["w3"]),
        "g3": params["g3"].reshape(1, -1), "b3": params["b3"].reshape(1, -1),
        "w4": flat(params["w4"]),
        "g4": params["g4"].reshape(1, -1), "b4": params["b4"].reshape(1, -1),
        "w5": jnp.transpose(params["w5"][0], (1, 0)),            # (K, ndf*8)
    }


def _flops_estimate():
    total = 0
    l_in, c_in = L_IN, NC_IN
    for c_out, pad_out in [(ndf, True), (ndf * 2, True), (ndf * 4, True), (ndf * 8, False)]:
        d = N_BATCH * (l_in + 2) - (K - 1)
        l_out = l_in // 2
        rows = N_BATCH * ((l_out + 2) if pad_out else l_out)
        total += 2 * d * (K * c_in) * c_out + 2 * rows * d * c_out
        l_in, c_in = l_out, c_out
    total += 2 * N_BATCH * K * (ndf * 8)
    return total


@jax.jit
def discriminator_forward(prep, x):
    args = (x.astype(jnp.float32),
            prep["w1"],
            prep["w2"], prep["g2"], prep["b2"],
            prep["w3"], prep["g3"], prep["b3"],
            prep["w4"], prep["g4"], prep["b4"],
            prep["w5"])

    bytes_accessed = sum(int(a.size) * 4 for a in args) + N_BATCH * 4
    vmem_spec = pl.BlockSpec(memory_space=pltpu.MemorySpace.VMEM)

    out = pl.pallas_call(
        _disc_kernel,
        out_shape=jax.ShapeDtypeStruct((N_BATCH, 1), jnp.float32),
        # Single program: no grid; the whole (tiny, ~60 KB) operand set lives in VMEM.
        in_specs=[vmem_spec] * len(args),
        out_specs=vmem_spec,
        cost_estimate=pl.CostEstimate(flops=_flops_estimate(), transcendentals=256,
                                      bytes_accessed=bytes_accessed),
    )(*args)
    # TODO(synk): for large batches, add a leading "parallel" grid axis over batch so the
    # second TensorCore on v7x is used; BN batch stats would then need a cross-core combine,
    # so at this toy batch size the kernel stays a single program.
    return out.reshape(N_BATCH, 1, 1)


# ---------------------------------------------------------------------------
# Parameters (deterministic, DCGAN-style init) and a plain-JAX reference
# ---------------------------------------------------------------------------
def init_params(key):
    ks = jax.random.split(key, 5)

    def conv_w(k, c_out, c_in, ksz):
        return 0.02 * jax.random.normal(k, (c_out, c_in, ksz), jnp.float32)

    return {
        "w1": conv_w(ks[0], ndf, NC_IN, 4),
        "w2": conv_w(ks[1], ndf * 2, ndf, 4),
        "g2": jnp.ones((ndf * 2,), jnp.float32),
        "b2": jnp.zeros((ndf * 2,), jnp.float32),
        "w3": conv_w(ks[2], ndf * 4, ndf * 2, 4),
        "g3": jnp.ones((ndf * 4,), jnp.float32),
        "b3": jnp.zeros((ndf * 4,), jnp.float32),
        "w4": conv_w(ks[3], ndf * 8, ndf * 4, 4),
        "g4": jnp.ones((ndf * 8,), jnp.float32),
        "b4": jnp.zeros((ndf * 8,), jnp.float32),
        "w5": conv_w(ks[4], 1, ndf * 8, 4),
    }


def _reference_forward(params, x):
    # Pure-JAX im2col reference (same math as the PyTorch module) for validation.
    def conv(x, w, stride, pad):
        n, c, l = x.shape
        k = w.shape[2]
        xp = jnp.pad(x, ((0, 0), (0, 0), (pad, pad)))
        l_out = (l + 2 * pad - k) // stride + 1
        idx = stride * jnp.arange(l_out)[:, None] + jnp.arange(k)[None, :]
        patches = jnp.transpose(xp[:, :, idx], (0, 2, 1, 3)).reshape(n * l_out, c * k)
        wm = jnp.transpose(w, (1, 2, 0)).reshape(c * k, w.shape[0])
        y = patches @ wm
        return jnp.transpose(y.reshape(n, l_out, w.shape[0]), (0, 2, 1))

    def bn(x, g, b):
        mean = jnp.mean(x, axis=(0, 2), keepdims=True)
        var = jnp.mean((x - mean) ** 2, axis=(0, 2), keepdims=True)
        xn = (x - mean) * jax.lax.rsqrt(var + BN_EPS)
        return xn * g.reshape(1, -1, 1) + b.reshape(1, -1, 1)

    def lrelu(x):
        return jnp.where(x > 0, x, LRELU_SLOPE * x)

    h = lrelu(conv(x, params["w1"], 2, 1))
    h = lrelu(bn(conv(h, params["w2"], 2, 1), params["g2"], params["b2"]))
    h = lrelu(bn(conv(h, params["w3"], 2, 1), params["g3"], params["b3"]))
    h = lrelu(bn(conv(h, params["w4"], 2, 1), params["g4"], params["b4"]))
    return jax.nn.sigmoid(conv(h, params["w5"], 1, 0))


if __name__ == "__main__":
    key = jax.random.PRNGKey(0)
    pkey, xkey = jax.random.split(key)
    params = init_params(pkey)
    prep = prepare_params(params)
    # Small deterministic input consistent with the module: NCL = (2, 64, 64)
    x = jax.random.normal(xkey, (N_BATCH, NC_IN, L_IN), jnp.float32)

    out = discriminator_forward(prep, x)
    out = jax.block_until_ready(out)

    assert out.shape == (N_BATCH, 1, 1), out.shape
    assert bool(jnp.all((out >= 0.0) & (out <= 1.0)))
    ref = _reference_forward(params, x)
    assert bool(jnp.allclose(out, ref, atol=1e-2, rtol=1e-2)), (out, ref)
    print("KERNEL_OK")
</pallas_src>

<mosaic_0001>
module attributes {stable_mosaic.version = 11 : i64} {
  func.func @_disc_kernel(%arg0: memref<2x64x64xf32, #tpu.memory_space<vmem>>, %arg1: memref<256x8xf32, #tpu.memory_space<vmem>>, %arg2: memref<32x16xf32, #tpu.memory_space<vmem>>, %arg3: memref<1x16xf32, #tpu.memory_space<vmem>>, %arg4: memref<1x16xf32, #tpu.memory_space<vmem>>, %arg5: memref<64x32xf32, #tpu.memory_space<vmem>>, %arg6: memref<1x32xf32, #tpu.memory_space<vmem>>, %arg7: memref<1x32xf32, #tpu.memory_space<vmem>>, %arg8: memref<128x64xf32, #tpu.memory_space<vmem>>, %arg9: memref<1x64xf32, #tpu.memory_space<vmem>>, %arg10: memref<1x64xf32, #tpu.memory_space<vmem>>, %arg11: memref<4x64xf32, #tpu.memory_space<vmem>>, %arg12: memref<2x1xf32, #tpu.memory_space<vmem>>) attributes {dimension_semantics = [], scalar_prefetch = 0 : i64, scratch_operands = 0 : i64, tpu.core_type = #tpu.core_type<tc>} {
    %c0 = arith.constant 0 : index
    %c0_0 = arith.constant 0 : index
    %c0_1 = arith.constant 0 : index
    %0 = vector.load %arg0[%c0, %c0_0, %c0_1] : memref<2x64x64xf32, #tpu.memory_space<vmem>>, vector<2x64x64xf32>
    %cst = arith.constant 0.000000e+00 : f32
    %1 = vector.broadcast %cst : f32 to vector<1x64xf32>
    %2 = vector.extract_strided_slice %0 {offsets = [0, 0, 0], sizes = [1, 64, 64], strides = [1, 1, 1]} : vector<2x64x64xf32> to vector<1x64x64xf32>
    %3 = vector.shape_cast %2 : vector<1x64x64xf32> to vector<64x64xf32>
    %4 = tpu.transpose %3, [1, 0] : vector<64x64xf32> -> vector<64x64xf32>
    %5 = vector.extract_strided_slice %0 {offsets = [1, 0, 0], sizes = [1, 64, 64], strides = [1, 1, 1]} : vector<2x64x64xf32> to vector<1x64x64xf32>
    %6 = vector.shape_cast %5 : vector<1x64x64xf32> to vector<64x64xf32>
    %7 = tpu.transpose %6, [1, 0] : vector<64x64xf32> -> vector<64x64xf32>
    %8 = tpu.concatenate %1, %4, %1, %1, %7, %1 in 0 : vector<1x64xf32>, vector<64x64xf32>, vector<1x64xf32>, vector<1x64xf32>, vector<64x64xf32>, vector<1x64xf32> -> vector<132x64xf32>
    %c0_2 = arith.constant 0 : index
    %c0_3 = arith.constant 0 : index
    %9 = vector.load %arg1[%c0_2, %c0_3] : memref<256x8xf32, #tpu.memory_space<vmem>>, vector<256x8xf32>
    %10 = vector.extract_strided_slice %8 {offsets = [0, 0], sizes = [129, 64], strides = [1, 1]} : vector<132x64xf32> to vector<129x64xf32>
    %11 = vector.extract_strided_slice %8 {offsets = [1, 0], sizes = [129, 64], strides = [1, 1]} : vector<132x64xf32> to vector<129x64xf32>
    %12 = vector.extract_strided_slice %8 {offsets = [2, 0], sizes = [129, 64], strides = [1, 1]} : vector<132x64xf32> to vector<129x64xf32>
    %13 = vector.extract_strided_slice %8 {offsets = [3, 0], sizes = [129, 64], strides = [1, 1]} : vector<132x64xf32> to vector<129x64xf32>
    %14 = tpu.concatenate %10, %11, %12, %13 in 1 : vector<129x64xf32>, vector<129x64xf32>, vector<129x64xf32>, vector<129x64xf32> -> vector<129x256xf32>
    %cst_4 = arith.constant dense<0.000000e+00> : vector<129x8xf32>
    %15 = tpu.matmul %14, %9, %cst_4 {dimension_numbers = #tpu.dot_dimension_numbers<[1], [0], [0], [1], [0, 0, 1, 1], [], []>} : vector<129x256xf32>, vector<256x8xf32>, vector<129x8xf32> -> vector<129x8xf32>
    %16 = tpu.iota {dimensions = array<i32: 0>} : vector<34x129xi32>
    %17 = tpu.iota {dimensions = array<i32: 1>} : vector<34x129xi32>
    %c1_i32 = arith.constant 1 : i32
    %18 = vector.broadcast %c1_i32 : i32 to vector<34x129xi32>
    %19 = arith.subi %16, %18 : vector<34x129xi32>
    %c0_i32 = arith.constant 0 : i32
    %20 = vector.broadcast %c0_i32 : i32 to vector<34x129xi32>
    %21 = arith.cmpi sge, %19, %20 : vector<34x129xi32>
    %c32_i32 = arith.constant 32 : i32
    %22 = vector.broadcast %c32_i32 : i32 to vector<34x129xi32>
    %23 = arith.cmpi slt, %19, %22 : vector<34x129xi32>
    %24 = arith.andi %21, %23 : vector<34x129xi1>
    %c2_i32 = arith.constant 2 : i32
    %25 = vector.broadcast %c2_i32 : i32 to vector<34x129xi32>
    %26 = arith.muli %25, %19 : vector<34x129xi32>
    %c0_i32_5 = arith.constant 0 : i32
    %27 = vector.broadcast %c0_i32_5 : i32 to vector<34x129xi32>
    %28 = arith.addi %27, %26 : vector<34x129xi32>
    %29 = arith.cmpi eq, %17, %28 : vector<34x129xi32>
    %30 = arith.andi %24, %29 : vector<34x129xi1>
    %cst_6 = arith.constant 1.000000e+00 : f32
    %cst_7 = arith.constant 0.000000e+00 : f32
    %31 = vector.broadcast %cst_6 : f32 to vector<34x129xf32>
    %32 = vector.broadcast %cst_7 : f32 to vector<34x129xf32>
    %33 = arith.select %30, %31, %32 : vector<34x129xi1>, vector<34x129xf32>
    %c2_i32_8 = arith.constant 2 : i32
    %34 = vector.broadcast %c2_i32_8 : i32 to vector<34x129xi32>
    %35 = arith.muli %34, %19 : vector<34x129xi32>
    %c66_i32 = arith.constant 66 : i32
    %36 = vector.broadcast %c66_i32 : i32 to vector<34x129xi32>
    %37 = arith.addi %36, %35 : vector<34x129xi32>
    %38 = arith.cmpi eq, %17, %37 : vector<34x129xi32>
    %39 = arith.andi %24, %38 : vector<34x129xi1>
    %cst_9 = arith.constant 1.000000e+00 : f32
    %cst_10 = arith.constant 0.000000e+00 : f32
    %40 = vector.broadcast %cst_9 : f32 to vector<34x129xf32>
    %41 = vector.broadcast %cst_10 : f32 to vector<34x129xf32>
    %42 = arith.select %39, %40, %41 : vector<34x129xi1>, vector<34x129xf32>
    %43 = tpu.concatenate %33, %42 in 0 : vector<34x129xf32>, vector<34x129xf32> -> vector<68x129xf32>
    %cst_11 = arith.constant dense<0.000000e+00> : vector<68x8xf32>
    %44 = tpu.matmul %43, %15, %cst_11 {dimension_numbers = #tpu.dot_dimension_numbers<[1], [0], [0], [1], [0, 0, 1, 1], [], []>} : vector<68x129xf32>, vector<129x8xf32>, vector<68x8xf32> -> vector<68x8xf32>
    %cst_12 = arith.constant 0.000000e+00 : f32
    %45 = vector.broadcast %cst_12 : f32 to vector<68x8xf32>
    %46 = arith.cmpf ogt, %44, %45 : vector<68x8xf32>
    %cst_13 = arith.constant 2.000000e-01 : f32
    %47 = vector.broadcast %cst_13 : f32 to vector<68x8xf32>
    %48 = arith.mulf %47, %44 : vector<68x8xf32>
    %49 = arith.select %46, %44, %48 : vector<68x8xi1>, vector<68x8xf32>
    %c0_14 = arith.constant 0 : index
    %c0_15 = arith.constant 0 : index
    %50 = vector.load %arg2[%c0_14, %c0_15] : memref<32x16xf32, #tpu.memory_space<vmem>>, vector<32x16xf32>
    %51 = vector.extract_strided_slice %49 {offsets = [0, 0], sizes = [65, 8], strides = [1, 1]} : vector<68x8xf32> to vector<65x8xf32>
    %52 = vector.extract_strided_slice %49 {offsets = [1, 0], sizes = [65, 8], strides = [1, 1]} : vector<68x8xf32> to vector<65x8xf32>
    %53 = vector.extract_strided_slice %49 {offsets = [2, 0], sizes = [65, 8], strides = [1, 1]} : vector<68x8xf32> to vector<65x8xf32>
    %54 = vector.extract_strided_slice %49 {offsets = [3, 0], sizes = [65, 8], strides = [1, 1]} : vector<68x8xf32> to vector<65x8xf32>
    %55 = tpu.concatenate %51, %52, %53, %54 in 1 : vector<65x8xf32>, vector<65x8xf32>, vector<65x8xf32>, vector<65x8xf32> -> vector<65x32xf32>
    %cst_16 = arith.constant dense<0.000000e+00> : vector<65x16xf32>
    %56 = tpu.matmul %55, %50, %cst_16 {dimension_numbers = #tpu.dot_dimension_numbers<[1], [0], [0], [1], [0, 0, 1, 1], [], []>} : vector<65x32xf32>, vector<32x16xf32>, vector<65x16xf32> -> vector<65x16xf32>
    %57 = tpu.iota {dimensions = array<i32: 0>} : vector<18x65xi32>
    %58 = tpu.iota {dimensions = array<i32: 1>} : vector<18x65xi32>
    %c1_i32_17 = arith.constant 1 : i32
    %59 = vector.broadcast %c1_i32_17 : i32 to vector<18x65xi32>
    %60 = arith.subi %57, %59 : vector<18x65xi32>
    %c0_i32_18 = arith.constant 0 : i32
    %61 = vector.broadcast %c0_i32_18 : i32 to vector<18x65xi32>
    %62 = arith.cmpi sge, %60, %61 : vector<18x65xi32>
    %c16_i32 = arith.constant 16 : i32
    %63 = vector.broadcast %c16_i32 : i32 to vector<18x65xi32>
    %64 = arith.cmpi slt, %60, %63 : vector<18x65xi32>
    %65 = arith.andi %62, %64 : vector<18x65xi1>
    %c2_i32_19 = arith.constant 2 : i32
    %66 = vector.broadcast %c2_i32_19 : i32 to vector<18x65xi32>
    %67 = arith.muli %66, %60 : vector<18x65xi32>
    %c0_i32_20 = arith.constant 0 : i32
    %68 = vector.broadcast %c0_i32_20 : i32 to vector<18x65xi32>
    %69 = arith.addi %68, %67 : vector<18x65xi32>
    %70 = arith.cmpi eq, %58, %69 : vector<18x65xi32>
    %71 = arith.andi %65, %70 : vector<18x65xi1>
    %cst_21 = arith.constant 1.000000e+00 : f32
    %cst_22 = arith.constant 0.000000e+00 : f32
    %72 = vector.broadcast %cst_21 : f32 to vector<18x65xf32>
    %73 = vector.broadcast %cst_22 : f32 to vector<18x65xf32>
    %74 = arith.select %71, %72, %73 : vector<18x65xi1>, vector<18x65xf32>
    %c2_i32_23 = arith.constant 2 : i32
    %75 = vector.broadcast %c2_i32_23 : i32 to vector<18x65xi32>
    %76 = arith.muli %75, %60 : vector<18x65xi32>
    %c34_i32 = arith.constant 34 : i32
    %77 = vector.broadcast %c34_i32 : i32 to vector<18x65xi32>
    %78 = arith.addi %77, %76 : vector<18x65xi32>
    %79 = arith.cmpi eq, %58, %78 : vector<18x65xi32>
    %80 = arith.andi %65, %79 : vector<18x65xi1>
    %cst_24 = arith.constant 1.000000e+00 : f32
    %cst_25 = arith.constant 0.000000e+00 : f32
    %81 = vector.broadcast %cst_24 : f32 to vector<18x65xf32>
    %82 = vector.broadcast %cst_25 : f32 to vector<18x65xf32>
    %83 = arith.select %80, %81, %82 : vector<18x65xi1>, vector<18x65xf32>
    %84 = tpu.concatenate %74, %83 in 0 : vector<18x65xf32>, vector<18x65xf32> -> vector<36x65xf32>
    %cst_26 = arith.constant dense<0.000000e+00> : vector<36x16xf32>
    %85 = tpu.matmul %84, %56, %cst_26 {dimension_numbers = #tpu.dot_dimension_numbers<[1], [0], [0], [1], [0, 0, 1, 1], [], []>} : vector<36x65xf32>, vector<65x16xf32>, vector<36x16xf32> -> vector<36x16xf32>
    %c0_27 = arith.constant 0 : index
    %c0_28 = arith.constant 0 : index
    %86 = vector.load %arg3[%c0_27, %c0_28] : memref<1x16xf32, #tpu.memory_space<vmem>>, vector<1x16xf32>
    %c0_29 = arith.constant 0 : index
    %c0_30 = arith.constant 0 : index
    %87 = vector.load %arg4[%c0_29, %c0_30] : memref<1x16xf32, #tpu.memory_space<vmem>>, vector<1x16xf32>
    %cst_31 = arith.constant dense<0.000000e+00> : vector<16xf32>
    %88 = vector.multi_reduction <add>, %85, %cst_31 [0] : vector<36x16xf32> to vector<16xf32>
    %89 = vector.shape_cast %88 : vector<16xf32> to vector<1x16xf32>
    %cst_32 = arith.constant 3.125000e-02 : f32
    %90 = vector.broadcast %cst_32 : f32 to vector<1x16xf32>
    %91 = arith.mulf %89, %90 : vector<1x16xf32>
    %92 = arith.mulf %85, %85 : vector<36x16xf32>
    %cst_33 = arith.constant dense<0.000000e+00> : vector<16xf32>
    %93 = vector.multi_reduction <add>, %92, %cst_33 [0] : vector<36x16xf32> to vector<16xf32>
    %94 = vector.shape_cast %93 : vector<16xf32> to vector<1x16xf32>
    %cst_34 = arith.constant 3.125000e-02 : f32
    %95 = vector.broadcast %cst_34 : f32 to vector<1x16xf32>
    %96 = arith.mulf %94, %95 : vector<1x16xf32>
    %97 = arith.mulf %91, %91 : vector<1x16xf32>
    %98 = arith.subf %96, %97 : vector<1x16xf32>
    %cst_35 = arith.constant 0.000000e+00 : f32
    %99 = vector.broadcast %cst_35 : f32 to vector<1x16xf32>
    %100 = arith.maximumf %98, %99 : vector<1x16xf32>
    %cst_36 = arith.constant 9.99999974E-6 : f32
    %101 = vector.broadcast %cst_36 : f32 to vector<1x16xf32>
    %102 = arith.addf %100, %101 : vector<1x16xf32>
    %103 = math.rsqrt %102 : vector<1x16xf32>
    %104 = arith.mulf %86, %103 : vector<1x16xf32>
    %105 = arith.mulf %91, %104 : vector<1x16xf32>
    %106 = arith.subf %87, %105 : vector<1x16xf32>
    %107 = vector.broadcast %104 : vector<1x16xf32> to vector<36x16xf32>
    %108 = arith.mulf %85, %107 : vector<36x16xf32>
    %109 = vector.broadcast %106 : vector<1x16xf32> to vector<36x16xf32>
    %110 = arith.addf %108, %109 : vector<36x16xf32>
    %cst_37 = arith.constant 0.000000e+00 : f32
    %111 = vector.broadcast %cst_37 : f32 to vector<36x16xf32>
    %112 = arith.cmpf ogt, %110, %111 : vector<36x16xf32>
    %cst_38 = arith.constant 2.000000e-01 : f32
    %113 = vector.broadcast %cst_38 : f32 to vector<36x16xf32>
    %114 = arith.mulf %113, %110 : vector<36x16xf32>
    %115 = arith.select %112, %110, %114 : vector<36x16xi1>, vector<36x16xf32>
    %116 = tpu.iota {dimensions = array<i32: 0>} : vector<18x1xi32>
    %c1_i32_39 = arith.constant 1 : i32
    %117 = vector.broadcast %c1_i32_39 : i32 to vector<18x1xi32>
    %118 = arith.cmpi sge, %116, %117 : vector<18x1xi32>
    %c16_i32_40 = arith.constant 16 : i32
    %119 = vector.broadcast %c16_i32_40 : i32 to vector<18x1xi32>
    %120 = arith.cmpi sle, %116, %119 : vector<18x1xi32>
    %121 = arith.andi %118, %120 : vector<18x1xi1>
    %122 = arith.extui %121 : vector<18x1xi1> to vector<18x1xi32>
    %123 = arith.sitofp %122 : vector<18x1xi32> to vector<18x1xf32>
    %124 = tpu.concatenate %123, %123 in 0 : vector<18x1xf32>, vector<18x1xf32> -> vector<36x1xf32>
    %125 = vector.broadcast %124 : vector<36x1xf32> to vector<36x16xf32>
    %126 = arith.mulf %115, %125 : vector<36x16xf32>
    %c0_41 = arith.constant 0 : index
    %c0_42 = arith.constant 0 : index
    %127 = vector.load %arg5[%c0_41, %c0_42] : memref<64x32xf32, #tpu.memory_space<vmem>>, vector<64x32xf32>
    %128 = vector.extract_strided_slice %126 {offsets = [0, 0], sizes = [33, 16], strides = [1, 1]} : vector<36x16xf32> to vector<33x16xf32>
    %129 = vector.extract_strided_slice %126 {offsets = [1, 0], sizes = [33, 16], strides = [1, 1]} : vector<36x16xf32> to vector<33x16xf32>
    %130 = vector.extract_strided_slice %126 {offsets = [2, 0], sizes = [33, 16], strides = [1, 1]} : vector<36x16xf32> to vector<33x16xf32>
    %131 = vector.extract_strided_slice %126 {offsets = [3, 0], sizes = [33, 16], strides = [1, 1]} : vector<36x16xf32> to vector<33x16xf32>
    %132 = tpu.concatenate %128, %129, %130, %131 in 1 : vector<33x16xf32>, vector<33x16xf32>, vector<33x16xf32>, vector<33x16xf32> -> vector<33x64xf32>
    %cst_43 = arith.constant dense<0.000000e+00> : vector<33x32xf32>
    %133 = tpu.matmul %132, %127, %cst_43 {dimension_numbers = #tpu.dot_dimension_numbers<[1], [0], [0], [1], [0, 0, 1, 1], [], []>} : vector<33x64xf32>, vector<64x32xf32>, vector<33x32xf32> -> vector<33x32xf32>
    %134 = tpu.iota {dimensions = array<i32: 0>} : vector<10x33xi32>
    %135 = tpu.iota {dimensions = array<i32: 1>} : vector<10x33xi32>
    %c1_i32_44 = arith.constant 1 : i32
    %136 = vector.broadcast %c1_i32_44 : i32 to vector<10x33xi32>
    %137 = arith.subi %134, %136 : vector<10x33xi32>
    %c0_i32_45 = arith.constant 0 : i32
    %138 = vector.broadcast %c0_i32_45 : i32 to vector<10x33xi32>
    %139 = arith.cmpi sge, %137, %138 : vector<10x33xi32>
    %c8_i32 = arith.constant 8 : i32
    %140 = vector.broadcast %c8_i32 : i32 to vector<10x33xi32>
    %141 = arith.cmpi slt, %137, %140 : vector<10x33xi32>
    %142 = arith.andi %139, %141 : vector<10x33xi1>
    %c2_i32_46 = arith.constant 2 : i32
    %143 = vector.broadcast %c2_i32_46 : i32 to vector<10x33xi32>
    %144 = arith.muli %143, %137 : vector<10x33xi32>
    %c0_i32_47 = arith.constant 0 : i32
    %145 = vector.broadcast %c0_i32_47 : i32 to vector<10x33xi32>
    %146 = arith.addi %145, %144 : vector<10x33xi32>
    %147 = arith.cmpi eq, %135, %146 : vector<10x33xi32>
    %148 = arith.andi %142, %147 : vector<10x33xi1>
    %cst_48 = arith.constant 1.000000e+00 : f32
    %cst_49 = arith.constant 0.000000e+00 : f32
    %149 = vector.broadcast %cst_48 : f32 to vector<10x33xf32>
    %150 = vector.broadcast %cst_49 : f32 to vector<10x33xf32>
    %151 = arith.select %148, %149, %150 : vector<10x33xi1>, vector<10x33xf32>
    %c2_i32_50 = arith.constant 2 : i32
    %152 = vector.broadcast %c2_i32_50 : i32 to vector<10x33xi32>
    %153 = arith.muli %152, %137 : vector<10x33xi32>
    %c18_i32 = arith.constant 18 : i32
    %154 = vector.broadcast %c18_i32 : i32 to vector<10x33xi32>
    %155 = arith.addi %154, %153 : vector<10x33xi32>
    %156 = arith.cmpi eq, %135, %155 : vector<10x33xi32>
    %157 = arith.andi %142, %156 : vector<10x33xi1>
    %cst_51 = arith.constant 1.000000e+00 : f32
    %cst_52 = arith.constant 0.000000e+00 : f32
    %158 = vector.broadcast %cst_51 : f32 to vector<10x33xf32>
    %159 = vector.broadcast %cst_52 : f32 to vector<10x33xf32>
    %160 = arith.select %157, %158, %159 : vector<10x33xi1>, vector<10x33xf32>
    %161 = tpu.concatenate %151, %160 in 0 : vector<10x33xf32>, vector<10x33xf32> -> vector<20x33xf32>
    %cst_53 = arith.constant dense<0.000000e+00> : vector<20x32xf32>
    %162 = tpu.matmul %161, %133, %cst_53 {dimension_numbers = #tpu.dot_dimension_numbers<[1], [0], [0], [1], [0, 0, 1, 1], [], []>} : vector<20x33xf32>, vector<33x32xf32>, vector<20x32xf32> -> vector<20x32xf32>
    %c0_54 = arith.constant 0 : index
    %c0_55 = arith.constant 0 : index
    %163 = vector.load %arg6[%c0_54, %c0_55] : memref<1x32xf32, #tpu.memory_space<vmem>>, vector<1x32xf32>
    %c0_56 = arith.constant 0 : index
    %c0_57 = arith.constant 0 : index
    %164 = vector.load %arg7[%c0_56, %c0_57] : memref<1x32xf32, #tpu.memory_space<vmem>>, vector<1x32xf32>
    %cst_58 = arith.constant dense<0.000000e+00> : vector<32xf32>
    %165 = vector.multi_reduction <add>, %162, %cst_58 [0] : vector<20x32xf32> to vector<32xf32>
    %166 = vector.shape_cast %165 : vector<32xf32> to vector<1x32xf32>
    %cst_59 = arith.constant 6.250000e-02 : f32
    %167 = vector.broadcast %cst_59 : f32 to vector<1x32xf32>
    %168 = arith.mulf %166, %167 : vector<1x32xf32>
    %169 = arith.mulf %162, %162 : vector<20x32xf32>
    %cst_60 = arith.constant dense<0.000000e+00> : vector<32xf32>
    %170 = vector.multi_reduction <add>, %169, %cst_60 [0] : vector<20x32xf32> to vector<32xf32>
    %171 = vector.shape_cast %170 : vector<32xf32> to vector<1x32xf32>
    %cst_61 = arith.constant 6.250000e-02 : f32
    %172 = vector.broadcast %cst_61 : f32 to vector<1x32xf32>
    %173 = arith.mulf %171, %172 : vector<1x32xf32>
    %174 = arith.mulf %168, %168 : vector<1x32xf32>
    %175 = arith.subf %173, %174 : vector<1x32xf32>
    %cst_62 = arith.constant 0.000000e+00 : f32
    %176 = vector.broadcast %cst_62 : f32 to vector<1x32xf32>
    %177 = arith.maximumf %175, %176 : vector<1x32xf32>
    %cst_63 = arith.constant 9.99999974E-6 : f32
    %178 = vector.broadcast %cst_63 : f32 to vector<1x32xf32>
    %179 = arith.addf %177, %178 : vector<1x32xf32>
    %180 = math.rsqrt %179 : vector<1x32xf32>
    %181 = arith.mulf %163, %180 : vector<1x32xf32>
    %182 = arith.mulf %168, %181 : vector<1x32xf32>
    %183 = arith.subf %164, %182 : vector<1x32xf32>
    %184 = vector.broadcast %181 : vector<1x32xf32> to vector<20x32xf32>
    %185 = arith.mulf %162, %184 : vector<20x32xf32>
    %186 = vector.broadcast %183 : vector<1x32xf32> to vector<20x32xf32>
    %187 = arith.addf %185, %186 : vector<20x32xf32>
    %cst_64 = arith.constant 0.000000e+00 : f32
    %188 = vector.broadcast %cst_64 : f32 to vector<20x32xf32>
    %189 = arith.cmpf ogt, %187, %188 : vector<20x32xf32>
    %cst_65 = arith.constant 2.000000e-01 : f32
    %190 = vector.broadcast %cst_65 : f32 to vector<20x32xf32>
    %191 = arith.mulf %190, %187 : vector<20x32xf32>
    %192 = arith.select %189, %187, %191 : vector<20x32xi1>, vector<20x32xf32>
    %193 = tpu.iota {dimensions = array<i32: 0>} : vector<10x1xi32>
    %c1_i32_66 = arith.constant 1 : i32
    %194 = vector.broadcast %c1_i32_66 : i32 to vector<10x1xi32>
    %195 = arith.cmpi sge, %193, %194 : vector<10x1xi32>
    %c8_i32_67 = arith.constant 8 : i32
    %196 = vector.broadcast %c8_i32_67 : i32 to vector<10x1xi32>
    %197 = arith.cmpi sle, %193, %196 : vector<10x1xi32>
    %198 = arith.andi %195, %197 : vector<10x1xi1>
    %199 = arith.extui %198 : vector<10x1xi1> to vector<10x1xi32>
    %200 = arith.sitofp %199 : vector<10x1xi32> to vector<10x1xf32>
    %201 = tpu.concatenate %200, %200 in 0 : vector<10x1xf32>, vector<10x1xf32> -> vector<20x1xf32>
    %202 = vector.broadcast %201 : vector<20x1xf32> to vector<20x32xf32>
    %203 = arith.mulf %192, %202 : vector<20x32xf32>
    %c0_68 = arith.constant 0 : index
    %c0_69 = arith.constant 0 : index
    %204 = vector.load %arg8[%c0_68, %c0_69] : memref<128x64xf32, #tpu.memory_space<vmem>>, vector<128x64xf32>
    %205 = vector.extract_strided_slice %203 {offsets = [0, 0], sizes = [17, 32], strides = [1, 1]} : vector<20x32xf32> to vector<17x32xf32>
    %206 = vector.extract_strided_slice %203 {offsets = [1, 0], sizes = [17, 32], strides = [1, 1]} : vector<20x32xf32> to vector<17x32xf32>
    %207 = vector.extract_strided_slice %203 {offsets = [2, 0], sizes = [17, 32], strides = [1, 1]} : vector<20x32xf32> to vector<17x32xf32>
    %208 = vector.extract_strided_slice %203 {offsets = [3, 0], sizes = [17, 32], strides = [1, 1]} : vector<20x32xf32> to vector<17x32xf32>
    %209 = tpu.concatenate %205, %206, %207, %208 in 1 : vector<17x32xf32>, vector<17x32xf32>, vector<17x32xf32>, vector<17x32xf32> -> vector<17x128xf32>
    %cst_70 = arith.constant dense<0.000000e+00> : vector<17x64xf32>
    %210 = tpu.matmul %209, %204, %cst_70 {dimension_numbers = #tpu.dot_dimension_numbers<[1], [0], [0], [1], [0, 0, 1, 1], [], []>} : vector<17x128xf32>, vector<128x64xf32>, vector<17x64xf32> -> vector<17x64xf32>
    %211 = tpu.iota {dimensions = array<i32: 0>} : vector<4x17xi32>
    %212 = tpu.iota {dimensions = array<i32: 1>} : vector<4x17xi32>
    %c4_i32 = arith.constant 4 : i32
    %213 = vector.broadcast %c4_i32 : i32 to vector<4x17xi32>
    %214 = arith.cmpi slt, %211, %213 : vector<4x17xi32>
    %c2_i32_71 = arith.constant 2 : i32
    %215 = vector.broadcast %c2_i32_71 : i32 to vector<4x17xi32>
    %216 = arith.muli %215, %211 : vector<4x17xi32>
    %c0_i32_72 = arith.constant 0 : i32
    %217 = vector.broadcast %c0_i32_72 : i32 to vector<4x17xi32>
    %218 = arith.addi %217, %216 : vector<4x17xi32>
    %219 = arith.cmpi eq, %212, %218 : vector<4x17xi32>
    %220 = arith.andi %214, %219 : vector<4x17xi1>
    %cst_73 = arith.constant 1.000000e+00 : f32
    %cst_74 = arith.constant 0.000000e+00 : f32
    %221 = vector.broadcast %cst_73 : f32 to vector<4x17xf32>
    %222 = vector.broadcast %cst_74 : f32 to vector<4x17xf32>
    %223 = arith.select %220, %221, %222 : vector<4x17xi1>, vector<4x17xf32>
    %c2_i32_75 = arith.constant 2 : i32
    %224 = vector.broadcast %c2_i32_75 : i32 to vector<4x17xi32>
    %225 = arith.muli %224, %211 : vector<4x17xi32>
    %c10_i32 = arith.constant 10 : i32
    %226 = vector.broadcast %c10_i32 : i32 to vector<4x17xi32>
    %227 = arith.addi %226, %225 : vector<4x17xi32>
    %228 = arith.cmpi eq, %212, %227 : vector<4x17xi32>
    %229 = arith.andi %214, %228 : vector<4x17xi1>
    %cst_76 = arith.constant 1.000000e+00 : f32
    %cst_77 = arith.constant 0.000000e+00 : f32
    %230 = vector.broadcast %cst_76 : f32 to vector<4x17xf32>
    %231 = vector.broadcast %cst_77 : f32 to vector<4x17xf32>
    %232 = arith.select %229, %230, %231 : vector<4x17xi1>, vector<4x17xf32>
    %233 = tpu.concatenate %223, %232 in 0 : vector<4x17xf32>, vector<4x17xf32> -> vector<8x17xf32>
    %cst_78 = arith.constant dense<0.000000e+00> : vector<8x64xf32>
    %234 = tpu.matmul %233, %210, %cst_78 {dimension_numbers = #tpu.dot_dimension_numbers<[1], [0], [0], [1], [0, 0, 1, 1], [], []>} : vector<8x17xf32>, vector<17x64xf32>, vector<8x64xf32> -> vector<8x64xf32>
    %c0_79 = arith.constant 0 : index
    %c0_80 = arith.constant 0 : index
    %235 = vector.load %arg9[%c0_79, %c0_80] : memref<1x64xf32, #tpu.memory_space<vmem>>, vector<1x64xf32>
    %c0_81 = arith.constant 0 : index
    %c0_82 = arith.constant 0 : index
    %236 = vector.load %arg10[%c0_81, %c0_82] : memref<1x64xf32, #tpu.memory_space<vmem>>, vector<1x64xf32>
    %cst_83 = arith.constant dense<0.000000e+00> : vector<64xf32>
    %237 = vector.multi_reduction <add>, %234, %cst_83 [0] : vector<8x64xf32> to vector<64xf32>
    %238 = vector.shape_cast %237 : vector<64xf32> to vector<1x64xf32>
    %cst_84 = arith.constant 1.250000e-01 : f32
    %239 = vector.broadcast %cst_84 : f32 to vector<1x64xf32>
    %240 = arith.mulf %238, %239 : vector<1x64xf32>
    %241 = arith.mulf %234, %234 : vector<8x64xf32>
    %cst_85 = arith.constant dense<0.000000e+00> : vector<64xf32>
    %242 = vector.multi_reduction <add>, %241, %cst_85 [0] : vector<8x64xf32> to vector<64xf32>
    %243 = vector.shape_cast %242 : vector<64xf32> to vector<1x64xf32>
    %cst_86 = arith.constant 1.250000e-01 : f32
    %244 = vector.broadcast %cst_86 : f32 to vector<1x64xf32>
    %245 = arith.mulf %243, %244 : vector<1x64xf32>
    %246 = arith.mulf %240, %240 : vector<1x64xf32>
    %247 = arith.subf %245, %246 : vector<1x64xf32>
    %cst_87 = arith.constant 0.000000e+00 : f32
    %248 = vector.broadcast %cst_87 : f32 to vector<1x64xf32>
    %249 = arith.maximumf %247, %248 : vector<1x64xf32>
    %cst_88 = arith.constant 9.99999974E-6 : f32
    %250 = vector.broadcast %cst_88 : f32 to vector<1x64xf32>
    %251 = arith.addf %249, %250 : vector<1x64xf32>
    %252 = math.rsqrt %251 : vector<1x64xf32>
    %253 = arith.mulf %235, %252 : vector<1x64xf32>
    %254 = arith.mulf %240, %253 : vector<1x64xf32>
    %255 = arith.subf %236, %254 : vector<1x64xf32>
    %256 = vector.broadcast %253 : vector<1x64xf32> to vector<8x64xf32>
    %257 = arith.mulf %234, %256 : vector<8x64xf32>
    %258 = vector.broadcast %255 : vector<1x64xf32> to vector<8x64xf32>
    %259 = arith.addf %257, %258 : vector<8x64xf32>
    %cst_89 = arith.constant 0.000000e+00 : f32
    %260 = vector.broadcast %cst_89 : f32 to vector<8x64xf32>
    %261 = arith.cmpf ogt, %259, %260 : vector<8x64xf32>
    %cst_90 = arith.constant 2.000000e-01 : f32
    %262 = vector.broadcast %cst_90 : f32 to vector<8x64xf32>
    %263 = arith.mulf %262, %259 : vector<8x64xf32>
    %264 = arith.select %261, %259, %263 : vector<8x64xi1>, vector<8x64xf32>
    %c0_91 = arith.constant 0 : index
    %c0_92 = arith.constant 0 : index
    %265 = vector.load %arg11[%c0_91, %c0_92] : memref<4x64xf32, #tpu.memory_space<vmem>>, vector<4x64xf32>
    %266 = tpu.concatenate %265, %265 in 0 : vector<4x64xf32>, vector<4x64xf32> -> vector<8x64xf32>
    %267 = arith.mulf %264, %266 : vector<8x64xf32>
    %268 = vector.extract_strided_slice %267 {offsets = [0, 0], sizes = [4, 64], strides = [1, 1]} : vector<8x64xf32> to vector<4x64xf32>
    %cst_93 = arith.constant dense<0.000000e+00> : vector<4xf32>
    %269 = vector.multi_reduction <add>, %268, %cst_93 [1] : vector<4x64xf32> to vector<4xf32>
    %270 = vector.shape_cast %269 : vector<4xf32> to vector<4x1xf32>
    %cst_94 = arith.constant dense<0.000000e+00> : vector<1xf32>
    %271 = vector.multi_reduction <add>, %270, %cst_94 [0] : vector<4x1xf32> to vector<1xf32>
    %272 = vector.shape_cast %271 : vector<1xf32> to vector<1x1xf32>
    %273 = vector.extract_strided_slice %267 {offsets = [4, 0], sizes = [4, 64], strides = [1, 1]} : vector<8x64xf32> to vector<4x64xf32>
    %cst_95 = arith.constant dense<0.000000e+00> : vector<4xf32>
    %274 = vector.multi_reduction <add>, %273, %cst_95 [1] : vector<4x64xf32> to vector<4xf32>
    %275 = vector.shape_cast %274 : vector<4xf32> to vector<4x1xf32>
    %cst_96 = arith.constant dense<0.000000e+00> : vector<1xf32>
    %276 = vector.multi_reduction <add>, %275, %cst_96 [0] : vector<4x1xf32> to vector<1xf32>
    %277 = vector.shape_cast %276 : vector<1xf32> to vector<1x1xf32>
    %278 = tpu.concatenate %272, %277 in 0 : vector<1x1xf32>, vector<1x1xf32> -> vector<2x1xf32>
    %279 = arith.negf %278 : vector<2x1xf32>
    %280 = math.exp %279 : vector<2x1xf32>
    %cst_97 = arith.constant 1.000000e+00 : f32
    %281 = vector.broadcast %cst_97 : f32 to vector<2x1xf32>
    %282 = arith.addf %281, %280 : vector<2x1xf32>
    %283 = arith.divf %281, %282 : vector<2x1xf32>
    %c0_98 = arith.constant 0 : index
    %c0_99 = arith.constant 0 : index
    %284 = vector.load %arg12[%c0_98, %c0_99] : memref<2x1xf32, #tpu.memory_space<vmem>>, vector<2x1xf32>
    tpu.vector_store %arg12[%c0_98, %c0_99], %283 {strides = array<i32>} : memref<2x1xf32, #tpu.memory_space<vmem>>, vector<2x1xf32>,
    return
  }
}

</mosaic_0001>

<bundles_post_ra>
// kernel: discriminator_forward.1
= control target key start
LH: loop header
LB: loop body
LE: loop exit
PB: predicated region body
PF: predicated region fallthrough
CT: control target
= control target key end

     0   :  { %vm3326_vm0 = vcmask 1040384   ;;  %vm228_vm1 = vcmask 1046528   ;;  %vm364_vm2 = vcmask 1044480   ;;  %vm189_vm3 = vcmask 1041408   ;;  %s2175_s27 = smov 8   ;;  %s2176_s28 = smov 24   ;;  %s3312_s0 = inlined_call_operand.vmem [shape: f32[2,64,64], index: 0, kind: input, shape index: {}]   ;;  %s3313_s1 = inlined_call_operand.vmem [shape: f32[256,8], index: 1, kind: input, shape index: {}]   ;;  %s3314_s2 = inlined_call_operand.vmem [shape: f32[32,16], index: 2, kind: input, shape index: {}]   ;;  %s3315_s3 = inlined_call_operand.vmem [shape: f32[1,16], index: 3, kind: input, shape index: {}]   ;;  %s3316_s4 = inlined_call_operand.vmem [shape: f32[1,16], index: 4, kind: input, shape index: {}]   ;;  %s3317_s5 = inlined_call_operand.vmem [shape: f32[64,32], index: 5, kind: input, shape index: {}]   ;;  %s3318_s6 = inlined_call_operand.vmem [shape: f32[1,32], index: 6, kind: input, shape index: {}]   ;;  %s3319_s8 = inlined_call_operand.vmem [shape: f32[128,64], index: 8, kind: input, shape index: {}]   ;;  %s3320_s7 = inlined_call_operand.vmem [shape: f32[1,32], index: 7, kind: input, shape index: {}]   ;;  %s3321_s9 = inlined_call_operand.vmem [shape: f32[1,64], index: 9, kind: input, shape index: {}]   ;;  %s3322_s10 = inlined_call_operand.vmem [shape: f32[1,64], index: 10, kind: input, shape index: {}]   ;;  %s3323_s11 = inlined_call_operand.vmem [shape: f32[4,64], index: 11, kind: input, shape index: {}]   ;;  %s3324_s12 = inlined_call_operand.vmem [shape: f32[2,1], index: 12, kind: output, shape index: {}]  }
   0x1   :  { %v41_v0 = vld [vmem:[%s3312_s0] sm:$0xff]  ;;  %v42_v3 = vld [vmem:[%s3312_s0 + $0x8] sm:$0xff]  ;;  %v43_v6 = vld [vmem:[%s3312_s0 + $0x10] sm:$0xff]  ;;  %vm162_vm4 = vcmask 1042432   ;;  %vm313_vm5 = vcmask 1045504   ;;  %vm3325_vm6 = vcmask 523264  }
   0x2   :  { %v49_v1 = vld [vmem:[%s3312_s0 + $0x40] sm:$0xff]  ;;  %v50_v4 = vld [vmem:[%s3312_s0 + $0x48] sm:$0xff]  ;;  %v51_v7 = vld [vmem:[%s3312_s0 + $0x50] sm:$0xff]  ;;  %vm755_vm10 = vcmask 7168   ;;  %s2180_s29 = smov 96  }
   0x3   :  { %v1992_v2 = vpack.i.bf16 %v49_v1, %v41_v0  ;;  %v1994_v5 = vpack.i.bf16 %v50_v4, %v42_v3  ;;  %v1996_v8 = vpack.i.bf16 %v51_v7, %v43_v6  ;;  %v44_v9 = vld [vmem:[%s3312_s0 + $0x18] sm:$0xff]  ;;  %v45_v12 = vld [vmem:[%s3312_s0 + $0x20] sm:$0xff]  ;;  %v46_v15 = vld [vmem:[%s3312_s0 + $0x28] sm:$0xff] }
   0x4   :  { %v52_v10 = vld [vmem:[%s3312_s0 + $0x58] sm:$0xff]  ;;  %v53_v13 = vld [vmem:[%s3312_s0 + $0x60] sm:$0xff]  ;;  %v54_v16 = vld [vmem:[%s3312_s0 + $0x68] sm:$0xff] }
   0x5   :  { %1993 = vxpose.xlu0.b32.start [1/8] (short) (narrow) %v1992_v2, 64  ;;  %v1998_v11 = vpack.i.bf16 %v52_v10, %v44_v9  ;;  %v2000_v14 = vpack.i.bf16 %v53_v13, %v45_v12  ;;  %v2002_v17 = vpack.i.bf16 %v54_v16, %v46_v15  ;;  %v47_v18 = vld [vmem:[%s3312_s0 + $0x30] sm:$0xff]  ;;  %v48_v21 = vld [vmem:[%s3312_s0 + $0x38] sm:$0xff] }
   0x6   :  { %v55_v19 = vld [vmem:[%s3312_s0 + $0x70] sm:$0xff]  ;;  %v56_v22 = vld [vmem:[%s3312_s0 + $0x78] sm:$0xff]  ;;  %s2171_s0 = smov 64  }
   0x7   :  { %v2004_v20 = vpack.i.bf16 %v55_v19, %v47_v18  ;;  %v2006_v23 = vpack.i.bf16 %v56_v22, %v48_v21 }
   0xd   :  { %1995 = vxpose.xlu0.b32.cont [2/8] (short) (narrow) %v1994_v5, 64 }
  0x15   :  { %1997 = vxpose.xlu0.b32.cont [3/8] (short) (narrow) %v1996_v8, 64 }
  0x1d   :  { %1999 = vxpose.xlu0.b32.cont [4/8] (short) (narrow) %v1998_v11, 64 }
  0x25   :  { %2001 = vxpose.xlu0.b32.cont [5/8] (short) (narrow) %v2000_v14, 64 }
  0x2d   :  { %2003 = vxpose.xlu0.b32.cont [6/8] (short) (narrow) %v2002_v17, 64 }
  0x35   :  { %2005 = vxpose.xlu0.b32.cont [7/8] (short) (narrow) %v2004_v20, 64 }
  0x3d   :  { %2007 = vxpose.xlu0.b32.end [8/8] (short) (narrow) %v2006_v23, 64 }
  0xa9   :  { %v2294_v24 = vpop.trf.xlu0 }
  0xaa   :  { %v2009_v25 = vunpack.i.l.bf16 %v2294_v24  ;;  %v2012_v17 = vunpack.i.h.bf16 %v2294_v24 }
  0xac   :  { %v130_v26 = vrot.slane %v2009_v25, 7 }
  0xae   :  { %v2301_v29 = vsel %vm3326_vm0, 0.0, %v130_v26 }
  0xaf   :  { %v229_v32 = vrot.slane %v2301_v29, 1  ;;  %v365_v34 = vrot.slane %v2301_v29, 3 }
  0xb1   :  { %v2297_v27 = vpop.trf.xlu0 }
  0xb2   :  { %v2014_v28 = vunpack.i.l.bf16 %v2297_v27  ;;  %v2017_v18 = vunpack.i.h.bf16 %v2297_v27 }
  0xb4   :  { %v131_v30 = vrot.slane %v2014_v28, 7 }
  0xb6   :  { %v2304_v31 = vsel %vm3326_vm0, %v130_v26, %v131_v30 }
  0xb7   :  { %v230_v33 = vrot.slane %v2304_v31, 1  ;;  %v366_v35 = vrot.slane %v2304_v31, 3 }
  0xb9   :  { %v2310_v36 = vpop.trf.xlu0  ;;  %v231_v37 = vsel %vm228_vm1, %v229_v32, %v230_v33  ;;  %v367_v38 = vsel %vm364_vm2, %v365_v34, %v366_v35  ;;  %v163_v32 = vrot.slane %v2012_v17, 5 }
  0xba   :  { %v2019_v39 = vunpack.i.l.bf16 %v2310_v36  ;;  %v2048_v40 = vpack.i.bf16 %v367_v38, %v231_v37  ;;  %v2022_v19 = vunpack.i.h.bf16 %v2310_v36 }
  0xbc   :  { %v133_v41 = vrot.slane %v2019_v39, 7  ;;  %2049 = vrot.lane.b32.xlu1 %v2048_v40, %s2171_s0  ;;  %v166_v24 = vrot.slane %v2022_v19, 5 }
  0xbe   :  { %v2317_v42 = vsel %vm3326_vm0, %v131_v30, %v133_v41 }
  0xbf   :  { %v232_v43 = vrot.slane %v2317_v42, 1  ;;  %v368_v44 = vrot.slane %v2317_v42, 3 }
  0xc1   :  { %v2321_v45 = vpop.trf.xlu0  ;;  %v233_v46 = vsel %vm228_vm1, %v230_v33, %v232_v43  ;;  %v369_v47 = vsel %vm364_vm2, %v366_v35, %v368_v44  ;;  %v164_v33 = vrot.slane %v2017_v18, 5  ;;  %v205_v18 = vld [vmem:[%s3313_s1 + $0x60] sm:$0xff] }
  0xc2   :  { %v2024_v48 = vunpack.i.l.bf16 %v2321_v45  ;;  %v2053_v49 = vpack.i.bf16 %v369_v47, %v233_v46  ;;  %v2027_v40 = vunpack.i.h.bf16 %v2321_v45 }
  0xc4   :  { %v135_v50 = vrot.slane %v2024_v48, 7  ;;  %2054 = vrot.lane.b32.xlu1 %v2053_v49, %s2171_s0  ;;  %v2398_v49 = vsel %vm162_vm4, %v164_v33, %v166_v24 }
  0xc6   :  { %v2328_v51 = vsel %vm3326_vm0, %v133_v41, %v135_v50 }
  0xc7   :  { %v234_v52 = vrot.slane %v2328_v51, 1  ;;  %v370_v53 = vrot.slane %v2328_v51, 3 }
  0xc9   :  { %v2332_v54 = vpop.trf.xlu0  ;;  %v235_v55 = vsel %vm228_vm1, %v232_v43, %v234_v52  ;;  %v371_v56 = vsel %vm364_vm2, %v368_v44, %v370_v53 }
  0xca   :  { %v2029_v57 = vunpack.i.l.bf16 %v2332_v54  ;;  %v2058_v58 = vpack.i.bf16 %v371_v56, %v235_v55  ;;  %v2032_v45 = vunpack.i.h.bf16 %v2332_v54  ;;  %v384_v54 = vrot.slane %v2398_v49, 3 }
  0xcc   :  { %v137_v59 = vrot.slane %v2029_v57, 7  ;;  %2059 = vrot.lane.b32.xlu2 %v2058_v58, %s2171_s0  ;;  %v168_v58 = vrot.slane %v2027_v40, 5 }
  0xce   :  { %v2339_v60 = vsel %vm3326_vm0, %v135_v50, %v137_v59 }
  0xcf   :  { %v236_v61 = vrot.slane %v2339_v60, 1  ;;  %v372_v62 = vrot.slane %v2339_v60, 3 }
  0xd1   :  { %v2343_v63 = vpop.trf.xlu0  ;;  %v237_v0 = vsel %vm228_vm1, %v234_v52, %v236_v61  ;;  %v373_v1 = vsel %vm364_vm2, %v370_v53, %v372_v62  ;;  %v2403_v52 = vsel %vm162_vm4, %v163_v32, %v164_v33  ;;  %v203_v33 = vld [vmem:[%s3313_s1 + $0x50] sm:$0xff] }
  0xd2   :  { %v2034_v2 = vunpack.i.l.bf16 %v2343_v63  ;;  %v2063_v3 = vpack.i.bf16 %v373_v1, %v237_v0  ;;  %v382_v0 = vrot.slane %v2403_v52, 3  ;;  %v208_v1 = vld [vmem:[%s3313_s1 + $0x78] sm:$0xff] }
  0xd3   :  { %484 = vmatpush.msra.mxu0 %v208_v1 }
  0xd4   :  { %v139_v4 = vrot.slane %v2034_v2, 7  ;;  %2064 = vrot.lane.b32.xlu2 %v2063_v3, %s2171_s0  ;;  %v224_v2 = vld [vmem:[%s3313_s1 + $0xf8] sm:$0xff]  ;;  %v207_v3 = vld [vmem:[%s3313_s1 + $0x70] sm:$0xff] }
  0xd5   :  { %552 = vmatpush.msra.mxu1 %v224_v2  ;;  %485 = vmatpush.msra.mxu0 %v207_v3 }
  0xd6   :  { %v2350_v5 = vsel %vm3326_vm0, %v137_v59, %v139_v4  ;;  %v248_v59 = vrot.slane %v2398_v49, 1 }
  0xd7   :  { %v238_v6 = vrot.slane %v2350_v5, 1  ;;  %v374_v7 = vrot.slane %v2350_v5, 3 }
  0xd9   :  { %v2354_v8 = vpop.trf.xlu0  ;;  %v239_v9 = vsel %vm228_vm1, %v236_v61, %v238_v6  ;;  %v375_v10 = vsel %vm364_vm2, %v372_v62, %v374_v7  ;;  %v170_v61 = vrot.slane %v2032_v45, 5  ;;  %v246_v62 = vrot.slane %v2403_v52, 1 }
  0xda   :  { %v2039_v11 = vunpack.i.l.bf16 %v2354_v8  ;;  %v2068_v12 = vpack.i.bf16 %v375_v10, %v239_v9  ;;  %v206_v9 = vld [vmem:[%s3313_s1 + $0x68] sm:$0xff]  ;;  %v2042_v17 = vunpack.i.h.bf16 %v2354_v8  ;;  %v204_v8 = vld [vmem:[%s3313_s1 + $0x58] sm:$0xff] }
  0xdb   :  { %v222_v10 = vld [vmem:[%s3313_s1 + $0xe8] sm:$0xff]  ;;  %486 = vmatpush.msra.mxu0 %v206_v9 }
  0xdc   :  { %v141_v13 = vrot.slane %v2039_v11, 7  ;;  %2069 = vrot.lane.b32.xlu1 %v2068_v12, %s2171_s0  ;;  %v2435_v11 = vsel %vm162_vm4, %v166_v24, %v168_v58  ;;  %v2037_v12 = vunpack.i.h.bf16 %v2343_v63  ;;  %v221_v63 = vld [vmem:[%s3313_s1 + $0xe0] sm:$0xff]  ;;  %v219_v24 = vld [vmem:[%s3313_s1 + $0xd0] sm:$0xff] }
  0xdd   :  { %487 = vmatpush.msra.mxu0 %v205_v18 }
  0xde   :  { %v2361_v14 = vsel %vm3326_vm0, %v139_v4, %v141_v13  ;;  %v223_v4 = vld [vmem:[%s3313_s1 + $0xf0] sm:$0xff] }
  0xdf   :  { %v240_v15 = vrot.slane %v2361_v14, 1  ;;  %v376_v16 = vrot.slane %v2361_v14, 3  ;;  %553 = vmatpush.msra.mxu1 %v223_v4  ;;  %488 = vmatpush.msra.mxu0 %v204_v8  ;;  %v211_v8 = vld [vmem:[%s3313_s1 + $0x90] sm:$0xff] }
  0xe1   :  { %v2043_v20 = vpop.trf.xlu0  ;;  %v241_v21 = vsel %vm228_vm1, %v238_v6, %v240_v15  ;;  %v377_v22 = vsel %vm364_vm2, %v374_v7, %v376_v16  ;;  %554 = vmatpush.msra.mxu1 %v222_v10  ;;  %489 = vmatpush.msra.mxu0 %v203_v33 }
  0xe2   :  { %v2047_v23 = vunpack.i.h.bf16 %v2043_v20  ;;  %v2044_v25 = vunpack.i.l.bf16 %v2043_v20  ;;  %v2073_v26 = vpack.i.bf16 %v377_v22, %v241_v21  ;;  %v250_v21 = vrot.slane %v2435_v11, 1 }
  0xe3   :  { %v386_v22 = vrot.slane %v2435_v11, 3  ;;  %555 = vmatpush.msra.mxu1 %v221_v63  ;;  %v213_v63 = vld [vmem:[%s3313_s1 + $0xa0] sm:$0xff] }
  0xe4   :  { %v2370_v28 = vrot.slane %v2047_v23, 5  ;;  %v143_v30 = vrot.slane %v2044_v25, 7  ;;  %2074 = vrot.lane.b32.xlu2 %v2073_v26, %s2171_s0  ;;  %v172_v23 = vrot.slane %v2037_v12, 5 }
  0xe6   :  { %v2375_v27 = vsel %vm162_vm4, %v2370_v28, 0.0  ;;  %v2378_v34 = vsel %vm3326_vm0, %v141_v13, %v143_v30  ;;  %v188_v35 = vsel %vm3326_vm0, %v143_v30, 0.0  ;;  %v249_v13 = vsel %vm228_vm1, %v246_v62, %v248_v59  ;;  %v220_v30 = vld [vmem:[%s3313_s1 + $0xd8] sm:$0xff] }
  0xe7   :  { %v190_v36 = vsel %vm189_vm3, %v188_v35, 0.0  ;;  %v260_v37 = vrot.slane %v2375_v27, 1  ;;  %v396_v38 = vrot.slane %v2375_v27, 3  ;;  %v242_v39 = vrot.slane %v2378_v34, 1  ;;  %556 = vmatpush.msra.mxu1 %v220_v30  ;;  %v209_v30 = vld [vmem:[%s3313_s1 + $0x80] sm:$0xff] }
  0xe8   :  { %v2387_v41 = vsel %vm162_vm4, %v190_v36, %v163_v32  ;;  %v378_v43 = vrot.slane %v2378_v34, 3  ;;  %v174_v32 = vrot.slane %v2042_v17, 5  ;;  %v251_v35 = vsel %vm228_vm1, %v248_v59, %v250_v21  ;;  %v197_v17 = vld [vmem:[%s3313_s1 + $0x20] sm:$0xff] }
  0xe9   :  { %v2128_v44 = vpack.i.bf16 %v396_v38, %v260_v37  ;;  %v243_v46 = vsel %vm228_vm1, %v240_v15, %v242_v39  ;;  %v244_v47 = vrot.slane %v2387_v41, 1  ;;  %v380_v48 = vrot.slane %v2387_v41, 3  ;;  %557 = vmatpush.msra.mxu1 %v219_v24 }
  0xea   :  { %v379_v50 = vsel %vm364_vm2, %v376_v16, %v378_v43  ;;  %v385_v15 = vsel %vm364_vm2, %v382_v0, %v384_v54  ;;  %v2441_v16 = vsel %vm162_vm4, %v168_v58, %v170_v61  ;;  %v387_v36 = vsel %vm364_vm2, %v384_v54, %v386_v22  ;;  %v216_v54 = vld [vmem:[%s3313_s1 + $0xb8] sm:$0xff] }
  0xeb   :  { %2129 = vrot.lane.b32.xlu0 %v2128_v44, %s2171_s0  ;;  %v2078_v53 = vpack.i.bf16 %v379_v50, %v243_v46  ;;  %v245_v55 = vsel %vm228_vm1, %v242_v39, %v244_v47  ;;  %v381_v56 = vsel %vm364_vm2, %v378_v43, %v380_v48  ;;  %v247_v6 = vsel %vm228_vm1, %v244_v47, %v246_v62  ;;  %v202_v39 = vld [vmem:[%s3313_s1 + $0x48] sm:$0xff]  ;;  %v217_v50 = vld [vmem:[%s3313_s1 + $0xc0] sm:$0xff]  ;;  %v215_v62 = vld [vmem:[%s3313_s1 + $0xb0] sm:$0xff] }
  0xec   :  { %v2083_v57 = vpack.i.bf16 %v381_v56, %v245_v55  ;;  %v383_v7 = vsel %vm364_vm2, %v380_v48, %v382_v0  ;;  %v2093_v20 = vpack.i.bf16 %v385_v15, %v249_v13  ;;  %v252_v25 = vrot.slane %v2441_v16, 1  ;;  %v218_v46 = vld [vmem:[%s3313_s1 + $0xc8] sm:$0xff]  ;;  %v201_v48 = vld [vmem:[%s3313_s1 + $0x40] sm:$0xff]  ;;  %490 = vmatpush.msra.mxu0 %v202_v39 }
  0xed   :  { %2079 = vrot.lane.b32.xlu1 %v2078_v53, %s2171_s0  ;;  %v2088_v19 = vpack.i.bf16 %v383_v7, %v247_v6  ;;  %v388_v26 = vrot.slane %v2441_v16, 3  ;;  %v2474_v40 = vsel %vm162_vm4, %v170_v61, %v172_v23  ;;  %v2482_v47 = vsel %vm162_vm4, %v172_v23, %v174_v32  ;;  %558 = vmatpush.msra.mxu1 %v218_v46  ;;  %v199_v61 = vld [vmem:[%s3313_s1 + $0x30] sm:$0xff]  ;;  %v198_v13 = vld [vmem:[%s3313_s1 + $0x28] sm:$0xff] }
  0xee   :  { %2084 = vrot.lane.b32.xlu2 %v2083_v57, %s2171_s0  ;;  %v253_v43 = vsel %vm228_vm1, %v250_v21, %v252_v25  ;;  %v2098_v45 = vpack.i.bf16 %v387_v36, %v251_v35  ;;  %v254_v55 = vrot.slane %v2474_v40, 1  ;;  %v390_v56 = vrot.slane %v2474_v40, 3  ;;  %v200_v57 = vld [vmem:[%s3313_s1 + $0x38] sm:$0xff]  ;;  %491 = vmatpush.msra.mxu0 %v201_v48  ;;  %v214_v15 = vld [vmem:[%s3313_s1 + $0xa8] sm:$0xff] }
  0xef   :  { %v389_v44 = vsel %vm364_vm2, %v386_v22, %v388_v26  ;;  %v256_v58 = vrot.slane %v2482_v47, 1  ;;  %v392_v59 = vrot.slane %v2482_v47, 3  ;;  %559 = vmatpush.msra.mxu1 %v217_v50  ;;  %v2512_v2 = vsel %vm162_vm4, %v174_v32, %v2370_v28  ;;  %v194_v23 = vld [vmem:[%s3313_s1 + $0x8] sm:$0xff] }
  0xf0   :  { %v2103_v53 = vpack.i.bf16 %v389_v44, %v253_v43  ;;  %492 = vmatpush.msra.mxu0 %v200_v57  ;;  %v255_v0 = vsel %vm228_vm1, %v252_v25, %v254_v55  ;;  %v391_v1 = vsel %vm364_vm2, %v388_v26, %v390_v56  ;;  %v258_v9 = vrot.slane %v2512_v2, 1  ;;  %v210_v25 = vld [vmem:[%s3313_s1 + $0x88] sm:$0xff]  ;;  %v193_v26 = vld [vmem:[%s3313_s1] sm:$0xff] }
  0xf1   :  { %560 = vmatpush.msra.mxu1 %v216_v54  ;;  %v257_v3 = vsel %vm228_vm1, %v254_v55, %v256_v58  ;;  %v393_v4 = vsel %vm364_vm2, %v390_v56, %v392_v59  ;;  %v2108_v6 = vpack.i.bf16 %v391_v1, %v255_v0  ;;  %v394_v10 = vrot.slane %v2512_v2, 3 }
  0xf2   :  { %493 = vmatpush.msra.mxu0 %v199_v61  ;;  %v2113_v7 = vpack.i.bf16 %v393_v4, %v257_v3  ;;  %v259_v12 = vsel %vm228_vm1, %v256_v58, %v258_v9  ;;  %v261_v18 = vsel %vm228_vm1, %v258_v9, %v260_v37  ;;  %v212_v37 = vld [vmem:[%s3313_s1 + $0x98] sm:$0xff]  ;;  %v315_v32 = vrot.slane %v2304_v31, 2 }
  0xf3   :  { %561 = vmatpush.msra.mxu1 %v215_v62  ;;  %v395_v28 = vsel %vm364_vm2, %v392_v59, %v394_v10  ;;  %v314_v24 = vrot.slane %v2301_v29, 2  ;;  %v317_v46 = vrot.slane %v2317_v42, 2 }
  0xf4   :  { %494 = vmatpush.msra.mxu0 %v198_v13  ;;  %v2118_v21 = vpack.i.bf16 %v395_v28, %v259_v12 }
  0xf5   :  { %2089 = vrot.lane.b32.xlu1 %v2088_v19, %s2171_s0  ;;  %v397_v19 = vsel %vm364_vm2, %v394_v10, %v396_v38  ;;  %562 = vmatpush.msra.mxu1 %v214_v15  ;;  %v195_v38 = vld [vmem:[%s3313_s1 + $0x10] sm:$0xff]  ;;  %v316_v39 = vsel %vm313_vm5, %v314_v24, %v315_v32  ;;  %v318_v55 = vsel %vm313_vm5, %v315_v32, %v317_v46 }
  0xf6   :  { %2094 = vrot.lane.b32.xlu2 %v2093_v20, %s2171_s0  ;;  %v196_v20 = vld [vmem:[%s3313_s1 + $0x18] sm:$0xff]  ;;  %495 = vmatpush.msra.mxu0 %v197_v17  ;;  %v2123_v22 = vpack.i.bf16 %v397_v19, %v261_v18  ;;  %s2174_s1 = smov 16  }
  0xf7   :  { %563 = vmatpush.msra.mxu1 %v213_v63 }
  0xf8   :  { %496 = vmatpush.msra.mxu0 %v196_v20 }
  0xf9   :  { %564 = vmatpush.msra.mxu1 %v212_v37 }
  0xfa   :  { %497 = vmatpush.msra.mxu0 %v195_v38 }
  0xfb   :  { %565 = vmatpush.msra.mxu1 %v211_v8 }
  0xfc   :  { %498 = vmatpush.msra.mxu0 %v194_v23 }
  0xfd   :  { %2099 = vrot.lane.b32.xlu1 %v2098_v45, %s2171_s0  ;;  %566 = vmatpush.msra.mxu1 %v210_v25 }
  0xfe   :  { %2104 = vrot.lane.b32.xlu2 %v2103_v53, %s2171_s0  ;;  %499 = vmatpush.msra.mxu0 %v193_v26 }
  0xff   :  { %567 = vmatpush.msra.mxu1 %v209_v30 }
 0x105   :  { %2109 = vrot.lane.b32.xlu1 %v2108_v6, %s2171_s0 }
 0x106   :  { %2114 = vrot.lane.b32.xlu2 %v2113_v7, %s2171_s0 }
 0x10d   :  { %2119 = vrot.lane.b32.xlu1 %v2118_v21, %s2171_s0 }
 0x10e   :  { %2124 = vrot.lane.b32.xlu2 %v2123_v22, %s2171_s0 }
 0x126   :  { %v2060_v53 = vpop.permute.xlu2 %2059 }
 0x127   :  { %v2062_v58 = vunpack.i.h.bf16 %v2060_v53  ;;  %v2061_v59 = vunpack.i.l.bf16 %v2060_v53 }
 0x129   :  { %v452_v61 = vsel %vm3325_vm6, %v2317_v42, %v2061_v59  ;;  %v323_v42 = vrot.slane %v2350_v5, 2 }
 0x12e   :  { %v2050_v33 = vpop.permute.xlu1 %2049  ;;  %v2065_v0 = vpop.permute.xlu2 %2064 }
 0x12f   :  { %v2052_v35 = vunpack.i.h.bf16 %v2050_v33  ;;  %v2051_v36 = vunpack.i.l.bf16 %v2050_v33  ;;  %v2067_v1 = vunpack.i.h.bf16 %v2065_v0  ;;  %v2066_v3 = vunpack.i.l.bf16 %v2065_v0 }
 0x131   :  { %v450_v43 = vsel %vm3325_vm6, %v2301_v29, %v2051_v36  ;;  %v467_v44 = vsel %vm3325_vm6, %v316_v39, %v2052_v35  ;;  %v319_v29 = vrot.slane %v2328_v51, 2  ;;  %v453_v6 = vsel %vm3325_vm6, %v2328_v51, %v2066_v3 }
 0x132   :  { %500 = vmatmul.f32.vlgmr.msra.gmra.mxu0 %v450_v43  ;;  %568 = vmatmul.f32.vlgmr.msra.gmra.mxu1 %v467_v44  ;;  %v325_v51 = vrot.slane %v2361_v14, 2  ;;  %v331_v43 = vrot.slane %v2403_v52, 2 }
 0x133   :  { %v320_v54 = vsel %vm313_vm5, %v317_v46, %v319_v29 }
 0x134   :  { %v469_v62 = vsel %vm3325_vm6, %v320_v54, %v2062_v58  ;;  %v326_v63 = vsel %vm313_vm5, %v323_v42, %v325_v51 }
 0x136   :  { %v2055_v48 = vpop.permute.xlu1 %2054 }
 0x137   :  { %v2057_v45 = vunpack.i.h.bf16 %v2055_v48  ;;  %v2056_v50 = vunpack.i.l.bf16 %v2055_v48 }
 0x139   :  { %v451_v56 = vsel %vm3325_vm6, %v2304_v31, %v2056_v50  ;;  %v468_v57 = vsel %vm3325_vm6, %v318_v55, %v2057_v45  ;;  %v321_v31 = vrot.slane %v2339_v60, 2 }
 0x13a   :  { %503 = vmatmul.f32.gmra.mxu0 %v451_v56  ;;  %571 = vmatmul.f32.gmra.mxu1 %v468_v57 }
 0x13b   :  { %v322_v4 = vsel %vm313_vm5, %v319_v29, %v321_v31  ;;  %v324_v28 = vsel %vm313_vm5, %v321_v31, %v323_v42 }
 0x13c   :  { %v470_v7 = vsel %vm3325_vm6, %v322_v4, %v2067_v1 }
 0x13e   :  { %v2075_v17 = vpop.permute.xlu2 %2074 }
 0x13f   :  { %v2077_v18 = vunpack.i.h.bf16 %v2075_v17  ;;  %v2076_v19 = vunpack.i.l.bf16 %v2075_v17 }
 0x141   :  { %v455_v20 = vsel %vm3325_vm6, %v2350_v5, %v2076_v19  ;;  %v472_v21 = vsel %vm3325_vm6, %v326_v63, %v2077_v18  ;;  %v329_v5 = vrot.slane %v2387_v41, 2 }
 0x142   :  { %506 = vmatmul.f32.gmra.mxu0 %v452_v61  ;;  %574 = vmatmul.f32.gmra.mxu1 %v469_v62 }
 0x143   :  { %v332_v44 = vsel %vm313_vm5, %v329_v5, %v331_v43 }
 0x148   :  { %v2085_v26 = vpop.permute.xlu2 %2084 }
 0x149   :  { %v2087_v30 = vunpack.i.h.bf16 %v2085_v26  ;;  %v2086_v32 = vunpack.i.l.bf16 %v2085_v26 }
 0x14a   :  { %509 = vmatmul.f32.gmra.mxu0 %v453_v6  ;;  %577 = vmatmul.f32.gmra.mxu1 %v470_v7 }
 0x14b   :  { %v457_v24 = vsel %vm3325_vm6, %v2378_v34, %v2086_v32 }
 0x14e   :  { %v2070_v9 = vpop.permute.xlu1 %2069 }
 0x14f   :  { %v2072_v10 = vunpack.i.h.bf16 %v2070_v9  ;;  %v2071_v12 = vunpack.i.l.bf16 %v2070_v9 }
 0x150   :  { %v2095_v45 = vpop.permute.xlu2 %2094 }
 0x151   :  { %v454_v13 = vsel %vm3325_vm6, %v2339_v60, %v2071_v12  ;;  %v471_v15 = vsel %vm3325_vm6, %v324_v28, %v2072_v10  ;;  %v327_v60 = vrot.slane %v2378_v34, 2  ;;  %v333_v34 = vrot.slane %v2398_v49, 2 }
 0x152   :  { %512 = vmatmul.f32.gmra.mxu0 %v454_v13  ;;  %580 = vmatmul.f32.gmra.mxu1 %v471_v15  ;;  %v2097_v50 = vunpack.i.h.bf16 %v2095_v45  ;;  %v2096_v53 = vunpack.i.l.bf16 %v2095_v45 }
 0x153   :  { %v328_v8 = vsel %vm313_vm5, %v325_v51, %v327_v60  ;;  %v330_v33 = vsel %vm313_vm5, %v327_v60, %v329_v5  ;;  %v334_v55 = vsel %vm313_vm5, %v331_v43, %v333_v34 }
 0x154   :  { %v474_v35 = vsel %vm3325_vm6, %v330_v33, %v2087_v30  ;;  %v459_v56 = vsel %vm3325_vm6, %v2403_v52, %v2096_v53  ;;  %v476_v57 = vsel %vm3325_vm6, %v334_v55, %v2097_v50  ;;  %v337_v52 = vrot.slane %v2441_v16, 2 }
 0x158   :  { %v2105_v0 = vpop.permute.xlu2 %2104 }
 0x159   :  { %v2107_v31 = vunpack.i.h.bf16 %v2105_v0  ;;  %v2106_v1 = vunpack.i.l.bf16 %v2105_v0 }
 0x15a   :  { %515 = vmatmul.f32.gmra.mxu0 %v455_v20  ;;  %583 = vmatmul.f32.gmra.mxu1 %v472_v21 }
 0x15b   :  { %v461_v4 = vsel %vm3325_vm6, %v2435_v11, %v2106_v1 }
 0x15d   :  { %v2130_v30 = vpop.permute.xlu0 %2129 }
 0x15e   :  { %v2131_v32 = vunpack.i.l.bf16 %v2130_v30 }
 0x15f   :  { %v2080_v37 = vpop.permute.xlu1 %2079 }
 0x160   :  { %v2082_v22 = vunpack.i.h.bf16 %v2080_v37  ;;  %v2081_v38 = vunpack.i.l.bf16 %v2080_v37  ;;  %v2115_v13 = vpop.permute.xlu2 %2114 }
 0x161   :  { %v2117_v15 = vunpack.i.h.bf16 %v2115_v13  ;;  %v2116_v17 = vunpack.i.l.bf16 %v2115_v13 }
 0x162   :  { %v456_v23 = vsel %vm3325_vm6, %v2361_v14, %v2081_v38  ;;  %v473_v25 = vsel %vm3325_vm6, %v328_v8, %v2082_v22 }
 0x163   :  { %518 = vmatmul.f32.gmra.mxu0 %v456_v23  ;;  %586 = vmatmul.f32.gmra.mxu1 %v473_v25  ;;  %v463_v18 = vsel %vm3325_vm6, %v2474_v40, %v2116_v17 }
 0x167   :  { %v2090_v36 = vpop.permute.xlu1 %2089 }
 0x168   :  { %v2092_v14 = vunpack.i.h.bf16 %v2090_v36  ;;  %v2091_v39 = vunpack.i.l.bf16 %v2090_v36  ;;  %v2125_v38 = vpop.permute.xlu2 %2124  ;;  %v466_v36 = vsel %vm3325_vm6, %v2375_v27, %v2131_v32 }
 0x169   :  { %v2127_v8 = vunpack.i.h.bf16 %v2125_v38  ;;  %v2126_v23 = vunpack.i.l.bf16 %v2125_v38 }
 0x16a   :  { %v458_v46 = vsel %vm3325_vm6, %v2387_v41, %v2091_v39  ;;  %v475_v48 = vsel %vm3325_vm6, %v332_v44, %v2092_v14  ;;  %v335_v41 = vrot.slane %v2435_v11, 2  ;;  %v341_v11 = vrot.slane %v2482_v47, 2 }
 0x16b   :  { %521 = vmatmul.f32.gmra.mxu0 %v457_v24  ;;  %589 = vmatmul.f32.gmra.mxu1 %v474_v35  ;;  %v465_v26 = vsel %vm3325_vm6, %v2512_v2, %v2126_v23 }
 0x16c   :  { %v336_v54 = vsel %vm313_vm5, %v333_v34, %v335_v41  ;;  %v338_v3 = vsel %vm313_vm5, %v335_v41, %v337_v52 }
 0x16d   :  { %v478_v6 = vsel %vm3325_vm6, %v338_v3, %v2107_v31 }
 0x16f   :  { %v2100_v29 = vpop.permute.xlu1 %2099 }
 0x170   :  { %v2102_v58 = vunpack.i.h.bf16 %v2100_v29  ;;  %v2101_v59 = vunpack.i.l.bf16 %v2100_v29 }
 0x172   :  { %v460_v61 = vsel %vm3325_vm6, %v2398_v49, %v2101_v59  ;;  %v477_v62 = vsel %vm3325_vm6, %v336_v54, %v2102_v58  ;;  %v339_v49 = vrot.slane %v2474_v40, 2  ;;  %v345_v40 = vrot.slane %v2375_v27, 2 }
 0x173   :  { %524 = vmatmul.f32.gmra.mxu0 %v458_v46  ;;  %592 = vmatmul.f32.gmra.mxu1 %v475_v48 }
 0x174   :  { %v340_v10 = vsel %vm313_vm5, %v337_v52, %v339_v49  ;;  %v342_v51 = vsel %vm313_vm5, %v339_v49, %v341_v11 }
 0x175   :  { %v480_v19 = vsel %vm3325_vm6, %v342_v51, %v2117_v15 }
 0x177   :  { %v2110_v7 = vpop.permute.xlu1 %2109 }
 0x178   :  { %v2112_v42 = vunpack.i.h.bf16 %v2110_v7  ;;  %v2111_v9 = vunpack.i.l.bf16 %v2110_v7 }
 0x17a   :  { %v462_v12 = vsel %vm3325_vm6, %v2441_v16, %v2111_v9  ;;  %v479_v28 = vsel %vm3325_vm6, %v340_v10, %v2112_v42  ;;  %v343_v16 = vrot.slane %v2512_v2, 2 }
 0x17b   :  { %527 = vmatmul.f32.gmra.mxu0 %v459_v56  ;;  %595 = vmatmul.f32.gmra.mxu1 %v476_v57 }
 0x17c   :  { %v344_v60 = vsel %vm313_vm5, %v341_v11, %v343_v16  ;;  %v346_v25 = vsel %vm313_vm5, %v343_v16, %v345_v40  ;;  %v620_v11 = vlaneseq }
 0x17d   :  { %v482_v5 = vsel %vm3325_vm6, %v346_v25, %v2127_v8 }
 0x17e   :  { %v2664_v15 = vshrl.u32 %v620_v11, 7 }
 0x17f   :  { %v2120_v63 = vpop.permute.xlu1 %2119 }
 0x180   :  { %v2122_v20 = vunpack.i.h.bf16 %v2120_v63  ;;  %v2121_v21 = vunpack.i.l.bf16 %v2120_v63  ;;  %v2669_v63 = vadd.s32 4294967295, %v2664_v15  ;;  %v2672_v16 = vadd.s32 8, %v2664_v15 }
 0x182   :  { %v464_v37 = vsel %vm3325_vm6, %v2482_v47, %v2121_v21  ;;  %v481_v22 = vsel %vm3325_vm6, %v344_v60, %v2122_v20  ;;  %v2132_v47 = vunpack.i.h.bf16 %v2130_v30  ;;  %v2675_v21 = vmul.u32 2, %v2669_v63 }
 0x183   :  { %530 = vmatmul.f32.gmra.mxu0 %v460_v61  ;;  %598 = vmatmul.f32.gmra.mxu1 %v477_v62  ;;  %vm634_vm7 = vcmp.ge.s32.totalorder %v2669_v63, 0 }
 0x184   :  { %v483_v14 = vsel %vm3325_vm6, %v345_v40, %v2132_v47  ;;  %v2693_v47 = vadd.s32 16, %v2664_v15 }
 0x18b   :  { %533 = vmatmul.f32.gmra.mxu0 %v461_v4  ;;  %601 = vmatmul.f32.gmra.mxu1 %v478_v6 }
 0x193   :  { %536 = vmatmul.f32.gmra.mxu0 %v462_v12  ;;  %604 = vmatmul.f32.gmra.mxu1 %v479_v28 }
 0x19b   :  { %539 = vmatmul.f32.gmra.mxu0 %v463_v18  ;;  %607 = vmatmul.f32.gmra.mxu1 %v480_v19  ;;  %v2666_v19 = vand.u32 127, %v620_v11 }
 0x19d   :  { %v2678_v60 = vadd.s32 128, %v2666_v19 }
 0x19f   :  { %vm655_vm8 = vcmp.eq.s32.totalorder %v2678_v60, %v2675_v21 }
 0x1a0   :  { %vm665_vm9 = vmand %vm634_vm7, %vm655_vm8 }
 0x1a3   :  { %542 = vmatmul.f32.gmra.mxu0 %v464_v37  ;;  %610 = vmatmul.f32.gmra.mxu1 %v481_v22  ;;  %v2684_v22 = vadd.s32 4294967295, %v2672_v16 }
 0x1a5   :  { %v2690_v30 = vmul.u32 2, %v2684_v22 }
 0x1a7   :  { %vm657_vm11 = vcmp.eq.s32.totalorder %v2678_v60, %v2690_v30 }
 0x1ab   :  { %545 = vmatmul.f32.gmra.mxu0 %v465_v26  ;;  %613 = vmatmul.f32.gmra.mxu1 %v482_v5  ;;  %v2172_v26 = vmov 0.0  }
 0x1ac   :  { %v675_v5 = vsel %vm665_vm9, 1.0, %v2172_v26  ;;  %vm654_vm9 = vcmp.eq.s32.totalorder %v2666_v19, %v2675_v21 }
 0x1af   :  { %v501_v33 = vpop.f32.mrf.mxu0  ;;  %v569_v24 = vpop.f32.mrf.mxu1 }
 0x1b0   :  { %v2647_v35 = vadd.f32 %v569_v24, %v501_v33  ;;  %v1918_v33 = vadd.s32 4294967295, %v2693_v47 }
 0x1b2   :  { %vm1146_vm13 = vcmp.lt.s32.totalorder %v1918_v33, 16 }
 0x1b3   :  { %548 = vmatmul.f32.gmra.mxu0 %v466_v36  ;;  %616 = vmatmul.f32.gmra.mxu1 %v483_v14  ;;  %v651_v36 = vmul.u32 2, %v1918_v33  ;;  %v677_v14 = vsel %vm657_vm11, 1.0, %v2172_v26 }
 0x1b5   :  { %vm658_vm12 = vcmp.eq.s32.totalorder %v2666_v19, %v651_v36  ;;  %vm659_vm8 = vcmp.eq.s32.totalorder %v2678_v60, %v651_v36 }
 0x1b6   :  { %vm2705_vm14 = vmand %vm1146_vm13, %vm658_vm12 }
 0x1b7   :  { %v504_v39 = vpop.f32.mrf.mxu0  ;;  %v572_v2 = vpop.f32.mrf.mxu1 }
 0x1b8   :  { %v2652_v43 = vadd.f32 %v572_v2, %v504_v39  ;;  %v1158_v39 = vadd.s32 34, %v651_v36  ;;  %v624_v2 = vadd.s32 24, %v2664_v15 }
 0x1ba   :  { %vm1161_vm15 = vcmp.eq.s32.totalorder %v2666_v19, %v1158_v39 }
 0x1bb   :  { %vm2712_vm4 = vmand %vm1146_vm13, %vm1161_vm15 }
 0x1bc   :  { %vm2734_vm13 = vmand %vm634_vm7, %vm654_vm9 }
 0x1bf   :  { %v507_v44 = vpop.f32.mrf.mxu0  ;;  %v575_v46 = vpop.f32.mrf.mxu1 }
 0x1c0   :  { %v2654_v48 = vadd.f32 %v575_v46, %v507_v44 }
 0x1c7   :  { %v510_v45 = vpop.f32.mrf.mxu0  ;;  %v578_v34 = vpop.f32.mrf.mxu1 }
 0x1c8   :  { %v2656_v50 = vadd.f32 %v578_v34, %v510_v45  ;;  %v1919_v45 = vadd.s32 4294967295, %v624_v2  ;;  %v679_v34 = vsel %vm659_vm8, 1.0, %v2172_v26 }
 0x1cf   :  { %v513_v53 = vpop.f32.mrf.mxu0  ;;  %v581_v55 = vpop.f32.mrf.mxu1 }
 0x1d0   :  { %v2658_v56 = vadd.f32 %v581_v55, %v513_v53  ;;  %v652_v53 = vmul.u32 2, %v1919_v45  ;;  %v625_v55 = vadd.s32 32, %v2664_v15 }
 0x1d2   :  { %vm661_vm11 = vcmp.eq.s32.totalorder %v2678_v60, %v652_v53 }
 0x1d7   :  { %v516_v27 = vpop.f32.mrf.mxu0  ;;  %v584_v57 = vpop.f32.mrf.mxu1 }
 0x1d8   :  { %v2660_v29 = vadd.f32 %v584_v57, %v516_v27  ;;  %v2725_v27 = vadd.s32 4294967295, %v625_v55  ;;  %v684_v57 = vadd.s32 66, %v2675_v21 }
 0x1da   :  { %vm643_vm15 = vcmp.lt.s32.totalorder %v2725_v27, 32  ;;  %vm690_vm6 = vcmp.eq.s32.totalorder %v2678_v60, %v684_v57 }
 0x1e0   :  { %v519_v41 = vpop.f32.mrf.mxu0  ;;  %v587_v58 = vpop.f32.mrf.mxu1 }
 0x1e1   :  { %v2662_v59 = vadd.f32 %v587_v58, %v519_v41  ;;  %v685_v58 = vadd.s32 66, %v2690_v30 }
 0x1e8   :  { %v522_v54 = vpop.f32.mrf.mxu0  ;;  %v590_v61 = vpop.f32.mrf.mxu1 }
 0x1e9   :  { %v591_v62 = vadd.f32 %v590_v61, %v522_v54 }
 0x1f0   :  { %v525_v0 = vpop.f32.mrf.mxu0  ;;  %v593_v52 = vpop.f32.mrf.mxu1 }
 0x1f1   :  { %v594_v31 = vadd.f32 %v593_v52, %v525_v0 }
 0x1f8   :  { %v528_v1 = vpop.f32.mrf.mxu0  ;;  %v596_v3 = vpop.f32.mrf.mxu1 }
 0x1f9   :  { %v597_v24 = vadd.f32 %v596_v3, %v528_v1  ;;  %v687_v1 = vadd.s32 66, %v652_v53 }
 0x200   :  { %v531_v4 = vpop.f32.mrf.mxu0  ;;  %v599_v6 = vpop.f32.mrf.mxu1 }
 0x201   :  { %v600_v32 = vadd.f32 %v599_v6, %v531_v4 }
 0x208   :  { %v534_v7 = vpop.f32.mrf.mxu0  ;;  %v602_v49 = vpop.f32.mrf.mxu1 }
 0x209   :  { %v603_v23 = vadd.f32 %v602_v49, %v534_v7 }
 0x210   :  { %v537_v42 = vpop.f32.mrf.mxu0  ;;  %v605_v9 = vpop.f32.mrf.mxu1 }
 0x211   :  { %v606_v38 = vadd.f32 %v605_v9, %v537_v42 }
 0x218   :  { %v540_v10 = vpop.f32.mrf.mxu0  ;;  %v608_v12 = vpop.f32.mrf.mxu1 }
 0x219   :  { %v609_v37 = vadd.f32 %v608_v12, %v540_v10 }
 0x220   :  { %v543_v28 = vpop.f32.mrf.mxu0  ;;  %v611_v13 = vpop.f32.mrf.mxu1 }
 0x221   :  { %v612_v20 = vadd.f32 %v611_v13, %v543_v28 }
 0x228   :  { %v546_v17 = vpop.f32.mrf.mxu0  ;;  %v614_v51 = vpop.f32.mrf.mxu1 }
 0x229   :  { %v615_v18 = vadd.f32 %v614_v51, %v546_v17 }
 0x22b   :  { %782 = vmatpush.msra.mxu2 %v615_v18 }
 0x22d   :  { %783 = vmatpush.msra.mxu2 %v612_v20 }
 0x22f   :  { %784 = vmatpush.msra.mxu2 %v609_v37 }
 0x230   :  { %v549_v40 = vpop.f32.mrf.mxu0  ;;  %v617_v8 = vpop.f32.mrf.mxu1 }
 0x231   :  { %v618_v25 = vadd.f32 %v617_v8, %v549_v40  ;;  %785 = vmatpush.msra.mxu2 %v606_v38 }
 0x233   :  { %786 = vmatpush.msra.mxu2 %v603_v23  ;;  %1925 = vmatpush.msk.msra.mxu3 %vm3326_vm0, %v618_v25  ;;  %vm700_vm0 = vmand %vm634_vm7, %vm690_vm6 }
 0x234   :  { %1926 = vmatmul.msk.f32.vlgmr.msra.gmra.mxu3 %vm755_vm10, %v675_v5 }
 0x235   :  { %787 = vmatpush.msra.mxu2 %v600_v32 }
 0x237   :  { %788 = vmatpush.msra.mxu2 %v597_v24 }
 0x239   :  { %789 = vmatpush.msra.mxu2 %v594_v31 }
 0x23b   :  { %790 = vmatpush.msra.mxu2 %v591_v62  ;;  %v686_v62 = vadd.s32 66, %v651_v36 }
 0x23c   :  { %1927 = vmatmul.msk.f32.gmra.mxu3 %vm755_vm10, %v677_v14 }
 0x23d   :  { %791 = vmatpush.msra.mxu2 %v2662_v59  ;;  %vm694_vm6 = vcmp.eq.s32.totalorder %v2678_v60, %v686_v62 }
 0x23e   :  { %v714_v52 = vsel %vm694_vm6, 1.0, %v2172_v26  ;;  %vm696_vm6 = vcmp.eq.s32.totalorder %v2678_v60, %v687_v1 }
 0x23f   :  { %792 = vmatpush.msra.mxu2 %v2660_v29  ;;  %v2173_v29 = vmov 1.0   ;;  %v737_v31 = vrot.slane %v714_v52, 6  ;;  %v716_v7 = vsel %vm696_vm6, 1.0, %v2172_v26 }
 0x240   :  { %v741_v42 = vrot.slane %v716_v7, 6 }
 0x241   :  { %793 = vmatpush.msra.mxu2 %v2658_v56  ;;  %v653_v56 = vmul.u32 2, %v2725_v27 }
 0x242   :  { %v742_v28 = vsel %vm189_vm3, %v737_v31, %v741_v42 }
 0x243   :  { %794 = vmatpush.msra.mxu2 %v2656_v50  ;;  %vm663_vm8 = vcmp.eq.s32.totalorder %v2678_v60, %v653_v56  ;;  %v688_v9 = vadd.s32 66, %v653_v56 }
 0x244   :  { %1928 = vmatmul.msk.f32.gmra.mxu3 %vm755_vm10, %v679_v34  ;;  %vm673_vm9 = vmand %vm643_vm15, %vm663_vm8  ;;  %vm692_vm8 = vcmp.eq.s32.totalorder %v2678_v60, %v685_v58 }
 0x245   :  { %795 = vmatpush.msra.mxu2 %v2654_v48  ;;  %v681_v48 = vsel %vm661_vm11, 1.0, %v2172_v26  ;;  %vm3327_vm11 = vcmp.eq.s32.totalorder %v2666_v19, %v2690_v30  ;;  %v712_v54 = vsel %vm692_vm8, 1.0, %v2172_v26  ;;  %vm662_vm8 = vcmp.eq.s32.totalorder %v2666_v19, %v653_v56 }
 0x246   :  { %v733_v61 = vrot.slane %v712_v54, 6  ;;  %vm697_vm6 = vcmp.eq.s32.totalorder %v2666_v19, %v688_v9 }
 0x247   :  { %796 = vmatpush.msra.mxu2 %v2652_v43  ;;  %v683_v43 = vsel %vm673_vm9, 1.0, %v2172_v26 }
 0x248   :  { %v738_v4 = vsel %vm189_vm3, %v733_v61, %v737_v31 }
 0x249   :  { %797 = vmatpush.msra.mxu2 %v2647_v35  ;;  %v710_v35 = vsel %vm700_vm0, 1.0, %v2172_v26  ;;  %vm689_vm0 = vcmp.eq.s32.totalorder %v2666_v19, %v684_v57 }
 0x24a   :  { %1921 = vmatmul.msk.f32.vlgmr.msra.gmra.mxu2 %vm2734_vm13, %v2173_v29  ;;  %v730_v41 = vrot.slane %v710_v35, 6  ;;  %vm699_vm9 = vmand %vm634_vm7, %vm689_vm0  ;;  %vm691_vm0 = vcmp.eq.s32.totalorder %v2666_v19, %v685_v58 }
 0x24b   :  { %v709_v3 = vsel %vm699_vm9, 1.0, %v2172_v26  ;;  %v711_v12 = vsel %vm691_vm0, 1.0, %v2172_v26  ;;  %vm707_vm0 = vmand %vm643_vm15, %vm697_vm6 }
 0x24c   :  { %1929 = vmatmul.msk.f32.gmra.mxu3 %vm755_vm10, %v681_v48  ;;  %v754_v59 = vsel %vm189_vm3, %v683_v43, %v730_v41  ;;  %v734_v0 = vsel %vm189_vm3, %v730_v41, %v733_v61  ;;  %v729_v6 = vrot.slane %v709_v3, 6  ;;  %v731_v13 = vrot.slane %v711_v12, 6 }
 0x24d   :  { %v717_v23 = vsel %vm707_vm0, 1.0, %v2172_v26 }
 0x24e   :  { %v732_v51 = vsel %vm189_vm3, %v729_v6, %v731_v13  ;;  %v743_v25 = vrot.slane %v717_v23, 6 }
 0x252   :  { %1922 = vmatmul.msk.f32.gmra.mxu2 %vm3327_vm11, %v2173_v29  ;;  %vm660_vm11 = vcmp.eq.s32.totalorder %v2666_v19, %v652_v53 }
 0x254   :  { %1930 = vmatmul.msk.f32.gmra.mxu3 %vm755_vm10, %v754_v59 }
 0x25a   :  { %1923 = vmatmul.msk.f32.gmra.mxu2 %vm658_vm12, %v2173_v29  ;;  %vm672_vm12 = vmand %vm643_vm15, %vm662_vm8  ;;  %vm693_vm8 = vcmp.eq.s32.totalorder %v2666_v19, %v686_v62 }
 0x25b   :  { %v682_v49 = vsel %vm672_vm12, 1.0, %v2172_v26  ;;  %v713_v18 = vsel %vm693_vm8, 1.0, %v2172_v26  ;;  %vm695_vm12 = vcmp.eq.s32.totalorder %v2666_v19, %v687_v1 }
 0x25c   :  { %1931 = vmatmul.msk.f32.gmra.mxu3 %vm755_vm10, %v734_v0  ;;  %v753_v10 = vsel %vm189_vm3, %v682_v49, %v729_v6  ;;  %v735_v37 = vrot.slane %v713_v18, 6  ;;  %v715_v38 = vsel %vm695_vm12, 1.0, %v2172_v26 }
 0x25d   :  { %v739_v40 = vrot.slane %v715_v38, 6 }
 0x25f   :  { %v740_v8 = vsel %vm189_vm3, %v735_v37, %v739_v40  ;;  %v744_v5 = vsel %vm189_vm3, %v739_v40, %v743_v25 }
 0x262   :  { %1924 = vmatmul.msk.f32.gmra.mxu2 %vm660_vm11, %v2173_v29  ;;  %vm698_vm11 = vcmp.eq.s32.totalorder %v2678_v60, %v688_v9  ;;  %v736_v60 = vsel %vm189_vm3, %v731_v13, %v735_v37 }
 0x263   :  { %vm708_vm9 = vmand %vm643_vm15, %vm698_vm11 }
 0x264   :  { %1932 = vmatmul.msk.f32.gmra.mxu3 %vm755_vm10, %v738_v4  ;;  %v718_v11 = vsel %vm708_vm9, 1.0, %v2172_v26 }
 0x265   :  { %v745_v17 = vrot.slane %v718_v11, 6 }
 0x267   :  { %v746_v20 = vsel %vm189_vm3, %v741_v42, %v745_v17 }
 0x26a   :  { %810 = vmatmul.f32.gmra.mxu2 %v753_v10 }
 0x26c   :  { %1933 = vmatmul.msk.f32.gmra.mxu3 %vm755_vm10, %v742_v28 }
 0x272   :  { %813 = vmatmul.f32.gmra.mxu2 %v732_v51 }
 0x274   :  { %1934 = vmatmul.msk.f32.gmra.mxu3 %vm755_vm10, %v746_v20 }
 0x27a   :  { %816 = vmatmul.f32.gmra.mxu2 %v736_v60 }
 0x282   :  { %819 = vmatmul.f32.gmra.mxu2 %v740_v8 }
 0x28a   :  { %822 = vmatmul.f32.gmra.mxu2 %v744_v5 }
 0x2b7   :  { %v843_v32 = vpop.f32.mrf.mxu3 }
 0x2bf   :  { %v846_v24 = vpop.f32.mrf.mxu3 }
 0x2c7   :  { %v849_v45 = vpop.f32.mrf.mxu3 }
 0x2cd   :  { %v799_v33 = vpop.f32.mrf.mxu2 }
 0x2ce   :  { %v844_v36 = vadd.f32 %v843_v32, %v799_v33 }
 0x2cf   :  { %v852_v54 = vpop.f32.mrf.mxu3 }
 0x2d0   :  { %v879_v14 = vmul.f32 0.2, %v844_v36  ;;  %vm870_vm10 = vcmp.gt.f32.partialorder %v844_v36, 0.0 }
 0x2d2   :  { %v2808_v34 = vsel %vm870_vm10, %v844_v36, %v879_v14 }
 0x2d3   :  { %v954_v27 = vrot.slane %v2808_v34, 2  ;;  %v910_v57 = vrot.slane %v2808_v34, 1  ;;  %v998_v52 = vrot.slane %v2808_v34, 3 }
 0x2d5   :  { %v802_v39 = vpop.f32.mrf.mxu2 }
 0x2d6   :  { %v847_v2 = vadd.f32 %v846_v24, %v802_v39 }
 0x2d7   :  { %v855_v42 = vpop.f32.mrf.mxu3 }
 0x2d8   :  { %vm871_vm15 = vcmp.gt.f32.partialorder %v847_v2, 0.0  ;;  %v880_v53 = vmul.f32 0.2, %v847_v2 }
 0x2da   :  { %v2810_v55 = vsel %vm871_vm15, %v847_v2, %v880_v53  ;;  %vm1042_vm15 = vcmask 64512  }
 0x2db   :  { %v955_v56 = vrot.slane %v2810_v55, 2  ;;  %v911_v48 = vrot.slane %v2810_v55, 1  ;;  %v999_v61 = vrot.slane %v2810_v55, 3 }
 0x2dd   :  { %v805_v35 = vpop.f32.mrf.mxu2  ;;  %v956_v43 = vsel %vm313_vm5, %v954_v27, %v955_v56  ;;  %v912_v41 = vsel %vm228_vm1, %v910_v57, %v911_v48  ;;  %v1000_v3 = vsel %vm364_vm2, %v998_v52, %v999_v61 }
 0x2de   :  { %v850_v58 = vadd.f32 %v849_v45, %v805_v35  ;;  %971 = vrot.lane.b32.xlu2 %v956_v43, %s2174_s1  ;;  %927 = vrot.lane.b32.xlu1 %v912_v41, %s2175_s27 }
 0x2df   :  { %v858_v38 = vpop.f32.mrf.mxu3 }
 0x2e0   :  { %vm872_vm11 = vcmp.gt.f32.partialorder %v850_v58, 0.0  ;;  %v881_v59 = vmul.f32 0.2, %v850_v58 }
 0x2e2   :  { %v2821_v62 = vsel %vm872_vm11, %v850_v58, %v881_v59  ;;  %vm1052_vm11 = vcmask 130048  }
 0x2e3   :  { %v913_v0 = vrot.slane %v2821_v62, 1  ;;  %v1001_v6 = vrot.slane %v2821_v62, 3  ;;  %v957_v7 = vrot.slane %v2821_v62, 2 }
 0x2e5   :  { %v808_v31 = vpop.f32.mrf.mxu2  ;;  %v914_v1 = vsel %vm228_vm1, %v911_v48, %v913_v0  ;;  %v1002_v10 = vsel %vm364_vm2, %v999_v61, %v1001_v6  ;;  %v958_v12 = vsel %vm313_vm5, %v955_v56, %v957_v7 }
 0x2e6   :  { %v853_v4 = vadd.f32 %v852_v54, %v808_v31  ;;  %929 = vrot.lane.b32.xlu2 %v914_v1, %s2175_s27  ;;  %1015 = vrot.lane.b32.xlu1 %v1000_v3, %s2176_s28 }
 0x2e7   :  { %v861_v14 = vpop.f32.mrf.mxu3 }
 0x2e8   :  { %v882_v49 = vmul.f32 0.2, %v853_v4  ;;  %vm873_vm9 = vcmp.gt.f32.partialorder %v853_v4, 0.0 }
 0x2ea   :  { %v2833_v28 = vsel %vm873_vm9, %v853_v4, %v882_v49  ;;  %vm1062_vm9 = vcmask 195584  }
 0x2eb   :  { %v959_v11 = vrot.slane %v2833_v28, 2  ;;  %v915_v17 = vrot.slane %v2833_v28, 1  ;;  %v1003_v8 = vrot.slane %v2833_v28, 3 }
 0x2ed   :  { %v811_v9 = vpop.f32.mrf.mxu2  ;;  %v960_v18 = vsel %vm313_vm5, %v957_v7, %v959_v11  ;;  %v916_v20 = vsel %vm228_vm1, %v913_v0, %v915_v17  ;;  %v1004_v25 = vsel %vm364_vm2, %v1001_v6, %v1003_v8 }
 0x2ee   :  { %v856_v13 = vadd.f32 %v855_v42, %v811_v9  ;;  %1017 = vrot.lane.b32.xlu2 %v1002_v10, %s2176_s28  ;;  %973 = vrot.lane.b32.xlu1 %v958_v12, %s2174_s1 }
 0x2ef   :  { %v864_v58 = vpop.f32.mrf.mxu3 }
 0x2f0   :  { %v883_v51 = vmul.f32 0.2, %v856_v13  ;;  %vm874_vm8 = vcmp.gt.f32.partialorder %v856_v13, 0.0 }
 0x2f2   :  { %v2841_v37 = vsel %vm874_vm8, %v856_v13, %v883_v51  ;;  %vm1072_vm8 = vcmask 261120  }
 0x2f3   :  { %v917_v40 = vrot.slane %v2841_v37, 1  ;;  %v1005_v32 = vrot.slane %v2841_v37, 3  ;;  %v961_v33 = vrot.slane %v2841_v37, 2 }
 0x2f5   :  { %v814_v60 = vpop.f32.mrf.mxu2  ;;  %v918_v23 = vsel %vm228_vm1, %v915_v17, %v917_v40  ;;  %v1006_v39 = vsel %vm364_vm2, %v1003_v8, %v1005_v32  ;;  %v962_v2 = vsel %vm313_vm5, %v959_v11, %v961_v33 }
 0x2f6   :  { %975 = vrot.lane.b32.xlu2 %v960_v18, %s2174_s1  ;;  %931 = vrot.lane.b32.xlu1 %v916_v20, %s2175_s27  ;;  %v859_v5 = vadd.f32 %v858_v38, %v814_v60 }
 0x2f7   :  { %v867_v6 = vpop.f32.mrf.mxu3 }
 0x2f8   :  { %v884_v24 = vmul.f32 0.2, %v859_v5  ;;  %vm875_vm12 = vcmp.gt.f32.partialorder %v859_v5, 0.0 }
 0x2fa   :  { %v2855_v45 = vsel %vm875_vm12, %v859_v5, %v884_v24  ;;  %v898_v5 = vld [vmem:[%s3314_s2 + $0x8] sm:$0xff]  ;;  %v897_v24 = vld [vmem:[%s3314_s2] sm:$0xff]  ;;  %vm3334_vm12 = vcmask 1040384  }
 0x2fb   :  { %v963_v27 = vrot.slane %v2855_v45, 2  ;;  %v919_v56 = vrot.slane %v2855_v45, 1  ;;  %v1007_v54 = vrot.slane %v2855_v45, 3 }
 0x2fd   :  { %v817_v36 = vpop.f32.mrf.mxu2  ;;  %v964_v48 = vsel %vm313_vm5, %v961_v33, %v963_v27  ;;  %v920_v35 = vsel %vm228_vm1, %v917_v40, %v919_v56  ;;  %v1008_v0 = vsel %vm364_vm2, %v1005_v32, %v1007_v54 }
 0x2fe   :  { %933 = vrot.lane.b32.xlu2 %v918_v23, %s2175_s27  ;;  %1019 = vrot.lane.b32.xlu1 %v1004_v25, %s2176_s28  ;;  %v862_v53 = vadd.f32 %v861_v14, %v817_v36  ;;  %v900_v23 = vld [vmem:[%s3314_s2 + $0x18] sm:$0xff]  ;;  %v899_v25 = vld [vmem:[%s3314_s2 + $0x10] sm:$0xff] }
 0x2ff   :  { %1112 = vmatpush.msrb.mxu3 %v900_v23 }
 0x300   :  { %v885_v57 = vmul.f32 0.2, %v862_v53  ;;  %vm876_vm6 = vcmp.gt.f32.partialorder %v862_v53, 0.0 }
 0x301   :  { %1113 = vmatpush.msrb.mxu3 %v899_v25 }
 0x302   :  { %v2863_v43 = vsel %vm876_vm6, %v862_v53, %v885_v57  ;;  %vm1178_vm6 = vcmask 531456  }
 0x303   :  { %v921_v59 = vrot.slane %v2863_v43, 1  ;;  %v1009_v31 = vrot.slane %v2863_v43, 3  ;;  %v965_v1 = vrot.slane %v2863_v43, 2  ;;  %1114 = vmatpush.msrb.mxu3 %v898_v5 }
 0x305   :  { %v820_v41 = vpop.f32.mrf.mxu2  ;;  %v922_v61 = vsel %vm228_vm1, %v919_v56, %v921_v59  ;;  %v1010_v7 = vsel %vm364_vm2, %v1007_v54, %v1009_v31  ;;  %v966_v49 = vsel %vm313_vm5, %v963_v27, %v965_v1  ;;  %1115 = vmatpush.msrb.mxu3 %v897_v24 }
 0x306   :  { %1021 = vrot.lane.b32.xlu2 %v1006_v39, %s2176_s28  ;;  %977 = vrot.lane.b32.xlu1 %v962_v2, %s2174_s1  ;;  %v865_v52 = vadd.f32 %v864_v58, %v820_v41 }
 0x308   :  { %v886_v3 = vmul.f32 0.2, %v865_v52  ;;  %vm877_vm0 = vcmp.gt.f32.partialorder %v865_v52, 0.0 }
 0x30a   :  { %v2877_v42 = vsel %vm877_vm0, %v865_v52, %v886_v3 }
 0x30b   :  { %v967_v10 = vrot.slane %v2877_v42, 2  ;;  %v923_v12 = vrot.slane %v2877_v42, 1  ;;  %v1011_v20 = vrot.slane %v2877_v42, 3 }
 0x30d   :  { %v823_v4 = vpop.f32.mrf.mxu2  ;;  %v968_v11 = vsel %vm313_vm5, %v965_v1, %v967_v10  ;;  %v924_v17 = vsel %vm228_vm1, %v921_v59, %v923_v12  ;;  %v1012_v38 = vsel %vm364_vm2, %v1009_v31, %v1011_v20 }
 0x30e   :  { %979 = vrot.lane.b32.xlu2 %v964_v48, %s2174_s1  ;;  %935 = vrot.lane.b32.xlu1 %v920_v35, %s2175_s27  ;;  %v868_v9 = vadd.f32 %v867_v6, %v823_v4 }
 0x310   :  { %v887_v13 = vmul.f32 0.2, %v868_v9  ;;  %vm878_vm10 = vcmp.gt.f32.partialorder %v868_v9, 0.0 }
 0x312   :  { %v2885_v51 = vsel %vm878_vm10, %v868_v9, %v887_v13  ;;  %vm1315_vm10 = vcmp.ge.s32.totalorder %v2664_v15, 1 }
 0x313   :  { %v925_v18 = vrot.slane %v2885_v51, 1  ;;  %v1013_v40 = vrot.slane %v2885_v51, 3  ;;  %v969_v8 = vrot.slane %v2885_v51, 2  ;;  %v2975_v50 = vsel %vm1315_vm10, 1.0, %v2172_v26 }
 0x315   :  { %v926_v60 = vsel %vm228_vm1, %v923_v12, %v925_v18  ;;  %v1014_v32 = vsel %vm364_vm2, %v1011_v20, %v1013_v40  ;;  %v970_v33 = vsel %vm313_vm5, %v967_v10, %v969_v8 }
 0x316   :  { %937 = vrot.lane.b32.xlu2 %v922_v61, %s2175_s27  ;;  %1023 = vrot.lane.b32.xlu1 %v1008_v0, %s2176_s28 }
 0x31e   :  { %1025 = vrot.lane.b32.xlu2 %v1010_v7, %s2176_s28  ;;  %981 = vrot.lane.b32.xlu1 %v966_v49, %s2174_s1 }
 0x326   :  { %983 = vrot.lane.b32.xlu2 %v968_v11, %s2174_s1  ;;  %939 = vrot.lane.b32.xlu1 %v924_v17, %s2175_s27 }
 0x32e   :  { %941 = vrot.lane.b32.xlu2 %v926_v60, %s2175_s27  ;;  %1027 = vrot.lane.b32.xlu1 %v1012_v38, %s2176_s28 }
 0x336   :  { %1029 = vrot.lane.b32.xlu2 %v1014_v32, %s2176_s28  ;;  %985 = vrot.lane.b32.xlu1 %v970_v33, %s2174_s1 }
 0x338   :  { %v972_v36 = vpop.permute.xlu2 %971 }
 0x33e   :  { %987 = vrot.lane.b32.xlu2 %v969_v8, %s2174_s1  ;;  %943 = vrot.lane.b32.xlu1 %v925_v18, %s2175_s27 }
 0x340   :  { %v930_v14 = vpop.permute.xlu2 %929 }
 0x341   :  { %v1044_v35 = vsel %vm1042_vm15, %v2810_v55, %v930_v14 }
 0x346   :  { %1031 = vrot.lane.b32.xlu1 %v1013_v40, %s2176_s28 }
 0x348   :  { %v1018_v39 = vpop.permute.xlu2 %1017 }
 0x350   :  { %v928_v2 = vpop.permute.xlu1 %927  ;;  %v976_v57 = vpop.permute.xlu2 %975 }
 0x351   :  { %v1043_v53 = vsel %vm1042_vm15, %v2808_v34, %v928_v2 }
 0x352   :  { %v1053_v27 = vsel %vm1052_vm11, %v1043_v53, %v972_v36 }
 0x358   :  { %v1016_v56 = vpop.permute.xlu1 %1015  ;;  %v934_v34 = vpop.permute.xlu2 %933 }
 0x359   :  { %v1063_v48 = vsel %vm1062_vm9, %v1053_v27, %v1016_v56  ;;  %v1046_v3 = vsel %vm1042_vm15, %v2833_v28, %v934_v34  ;;  %v2966_v34 = vsel %vm2734_vm13, 1.0, %v2172_v26 }
 0x35a   :  { %1935 = vmatmul.msk.f32.vlgmr.msrb.gmra.mxu3 %vm1072_vm8, %v1063_v48 }
 0x360   :  { %v974_v41 = vpop.permute.xlu1 %973  ;;  %v1022_v61 = vpop.permute.xlu2 %1021 }
 0x361   :  { %v1054_v58 = vsel %vm1052_vm11, %v1044_v35, %v974_v41 }
 0x362   :  { %v1064_v59 = vsel %vm1062_vm9, %v1054_v58, %v1018_v39 }
 0x363   :  { %1936 = vmatmul.msk.f32.gmra.mxu3 %vm1072_vm8, %v1064_v59 }
 0x368   :  { %v932_v54 = vpop.permute.xlu1 %931  ;;  %v980_v55 = vpop.permute.xlu2 %979 }
 0x369   :  { %v1045_v0 = vsel %vm1042_vm15, %v2821_v62, %v932_v54  ;;  %v1334_v54 = vrot.slane %v2173_v29, 6 }
 0x36a   :  { %v1055_v31 = vsel %vm1052_vm11, %v1045_v0, %v976_v57 }
 0x370   :  { %v1020_v52 = vpop.permute.xlu1 %1019  ;;  %v938_v62 = vpop.permute.xlu2 %937 }
 0x371   :  { %v1065_v1 = vsel %vm1062_vm9, %v1055_v31, %v1020_v52  ;;  %v1048_v11 = vsel %vm1042_vm15, %v2855_v45, %v938_v62  ;;  %v2979_v52 = vrot.slane %v2975_v50, 6  ;;  %v2134_v31 = vpack.i.bf16 1.0, %v2975_v50 }
 0x372   :  { %1937 = vmatmul.msk.f32.gmra.mxu3 %vm1072_vm8, %v1065_v1 }
 0x373   :  { %v1335_v29 = vsel %vm189_vm3, %v2979_v52, %v1334_v54 }
 0x378   :  { %v978_v4 = vpop.permute.xlu1 %977  ;;  %v1026_v28 = vpop.permute.xlu2 %1025 }
 0x379   :  { %v1056_v6 = vsel %vm1052_vm11, %v1046_v3, %v978_v4  ;;  %v1157_v4 = vadd.s32 34, %v2690_v30 }
 0x37a   :  { %v1066_v7 = vsel %vm1062_vm9, %v1056_v6, %v1022_v61  ;;  %v2177_v61 = vmov 0  }
 0x37b   :  { %1938 = vmatmul.msk.f32.gmra.mxu3 %vm1072_vm8, %v1066_v7  ;;  %2140 = vset.pattern.permute.xlu1 %v2177_v61 }
 0x37c   :  { %2139 = vset.pattern.permute.xlu0 %v2177_v61  ;;  %2133 = vset.pattern.permute.xlu2 %v2177_v61 }
 0x37d   :  { %2135 = vperm.xlu2 %2133, %v2134_v31   ;;  %1354 = vperm.xlu1 %2140, %v1335_v29  }
 0x380   :  { %v936_v49 = vpop.permute.xlu1 %935  ;;  %v984_v60 = vpop.permute.xlu2 %983 }
 0x381   :  { %v1047_v9 = vsel %vm1042_vm15, %v2841_v37, %v936_v49  ;;  %v1155_v49 = vsel %vm2705_vm14, 1.0, %v2172_v26  ;;  %vm1236_vm14 = vcmask 125952  }
 0x382   :  { %v1057_v12 = vsel %vm1052_vm11, %v1047_v9, %v980_v55 }
 0x388   :  { %v1024_v10 = vpop.permute.xlu1 %1023  ;;  %v942_v40 = vpop.permute.xlu2 %941 }
 0x389   :  { %v1067_v13 = vsel %vm1062_vm9, %v1057_v12, %v1024_v10  ;;  %v1050_v45 = vsel %vm1042_vm15, %v2877_v42, %v942_v40 }
 0x38a   :  { %1939 = vmatmul.msk.f32.gmra.mxu3 %vm1072_vm8, %v1067_v13  ;;  %v1167_v13 = vsel %vm2712_vm4, 1.0, %v2172_v26 }
 0x38b   :  { %v1174_v44 = vrot.slane %v1167_v13, 6 }
 0x390   :  { %v982_v17 = vpop.permute.xlu1 %981  ;;  %v1030_v32 = vpop.permute.xlu2 %1029 }
 0x391   :  { %v1058_v18 = vsel %vm1052_vm11, %v1048_v11, %v982_v17 }
 0x392   :  { %v1068_v20 = vsel %vm1062_vm9, %v1058_v18, %v1026_v28 }
 0x393   :  { %1940 = vmatmul.msk.f32.gmra.mxu3 %vm1072_vm8, %v1068_v20 }
 0x398   :  { %v940_v37 = vpop.permute.xlu1 %939  ;;  %v988_v14 = vpop.permute.xlu2 %987 }
 0x399   :  { %v1049_v38 = vsel %vm1042_vm15, %v2863_v43, %v940_v37 }
 0x39a   :  { %v1059_v23 = vsel %vm1052_vm11, %v1049_v38, %v984_v60 }
 0x3a0   :  { %v1028_v8 = vpop.permute.xlu1 %1027 }
 0x3a1   :  { %v1069_v25 = vsel %vm1062_vm9, %v1059_v23, %v1028_v8 }
 0x3a2   :  { %1941 = vmatmul.msk.f32.gmra.mxu3 %vm1072_vm8, %v1069_v25 }
 0x3a8   :  { %v986_v5 = vpop.permute.xlu1 %985 }
 0x3a9   :  { %v1060_v33 = vsel %vm1052_vm11, %v1050_v45, %v986_v5 }
 0x3aa   :  { %v1070_v24 = vsel %vm1062_vm9, %v1060_v33, %v1030_v32 }
 0x3ab   :  { %1942 = vmatmul.msk.f32.gmra.mxu3 %vm1072_vm8, %v1070_v24 }
 0x3b0   :  { %v944_v43 = vpop.permute.xlu1 %943 }
 0x3b1   :  { %v1051_v36 = vsel %vm1042_vm15, %v2885_v51, %v944_v43  ;;  %v1156_v51 = vadd.s32 34, %v2675_v21  ;;  %vm1320_vm15 = vcmp.le.s32.totalorder %v2693_v47, 16 }
 0x3b2   :  { %v1061_v2 = vsel %vm1052_vm11, %v1051_v36, %v988_v14  ;;  %v1951_v0 = vsel %vm1320_vm15, 1.0, %v2172_v26 }
 0x3b3   :  { %vm1159_vm0 = vcmp.eq.s32.totalorder %v2666_v19, %v1156_v51  ;;  %v1339_v47 = vsel %vm189_vm3, %v1951_v0, %v2979_v52  ;;  %v1336_v55 = vrot.slane %v1951_v0, 6 }
 0x3b4   :  { %vm1162_vm13 = vmand %vm634_vm7, %vm1159_vm0  ;;  %1350 = vperm.xlu0 %2139, %v1339_v47  }
 0x3b5   :  { %v1165_v3 = vsel %vm1162_vm13, 1.0, %v2172_v26  ;;  %v1337_v7 = vsel %vm189_vm3, %v1334_v54, %v1336_v55 }
 0x3b6   :  { %v1171_v6 = vrot.slane %v1165_v3, 6  ;;  %1358 = vperm.xlu2 %2133, %v1337_v7  }
 0x3b8   :  { %v1032_v39 = vpop.permute.xlu1 %1031  ;;  %v1177_v62 = vsel %vm189_vm3, %v1155_v49, %v1171_v6 }
 0x3b9   :  { %v1071_v53 = vsel %vm1062_vm9, %v1061_v2, %v1032_v39  ;;  %vm3335_vm9 = vcmp.eq.s32.totalorder %v2666_v19, %v2690_v30 }
 0x3ba   :  { %1943 = vmatmul.msk.f32.gmra.mxu3 %vm1072_vm8, %v1071_v53  ;;  %v1154_v1 = vsel %vm3335_vm9, 1.0, %v2172_v26 }
 0x3dd   :  { %v1117_v42 = vpop.f32.mrf.mxu3 }
 0x3e6   :  { %v1120_v27 = vpop.f32.mrf.mxu3 }
 0x3f5   :  { %v1123_v56 = vpop.f32.mrf.mxu3 }
 0x3fe   :  { %v1126_v57 = vpop.f32.mrf.mxu3 }
 0x40d   :  { %v1129_v48 = vpop.f32.mrf.mxu3 }
 0x416   :  { %v1132_v35 = vpop.f32.mrf.mxu3 }
 0x425   :  { %v1135_v41 = vpop.f32.mrf.mxu3 }
 0x42e   :  { %v1138_v58 = vpop.f32.mrf.mxu3 }
 0x43d   :  { %v1141_v59 = vpop.f32.mrf.mxu3 }
 0x43e   :  { %1944 = vmatpush.msk.msrb.mxu2 %vm3334_vm12, %v1141_v59  ;;  %vm1160_vm12 = vcmp.eq.s32.totalorder %v2666_v19, %v1157_v4 }
 0x43f   :  { %v1166_v9 = vsel %vm1160_vm12, 1.0, %v2172_v26 }
 0x440   :  { %1203 = vmatpush.msrb.mxu2 %v1138_v58  ;;  %v1172_v10 = vrot.slane %v1166_v9, 6 }
 0x442   :  { %1204 = vmatpush.msrb.mxu2 %v1135_v41  ;;  %v1173_v12 = vsel %vm189_vm3, %v1171_v6, %v1172_v10  ;;  %v1175_v28 = vsel %vm189_vm3, %v1172_v10, %v1174_v44  ;;  %v1227_v44 = vld [vmem:[%s3315_s3] sm:$0x1]  ;;  %s2178_s3 = smov 48  }
 0x444   :  { %1205 = vmatpush.msrb.mxu2 %v1132_v35 }
 0x446   :  { %1206 = vmatpush.msrb.mxu2 %v1129_v48 }
 0x448   :  { %1207 = vmatpush.msrb.mxu2 %v1126_v57 }
 0x44a   :  { %1208 = vmatpush.msrb.mxu2 %v1123_v56 }
 0x44c   :  { %1209 = vmatpush.msrb.mxu2 %v1120_v27 }
 0x44e   :  { %1210 = vmatpush.msrb.mxu2 %v1117_v42 }
 0x44f   :  { %1945 = vmatmul.msk.f32.vlgmr.msrb.gmra.mxu2 %vm1178_vm6, %v2966_v34 }
 0x457   :  { %1946 = vmatmul.msk.f32.gmra.mxu2 %vm1178_vm6, %v1154_v1 }
 0x45f   :  { %1947 = vmatmul.msk.f32.gmra.mxu2 %vm1178_vm6, %v1177_v62 }
 0x467   :  { %1948 = vmatmul.msk.f32.gmra.mxu2 %vm1178_vm6, %v1173_v12 }
 0x46f   :  { %1949 = vmatmul.msk.f32.gmra.mxu2 %vm1178_vm6, %v1175_v28 }
 0x4d2   :  { %v3010_v11 = vpop.f32.mrf.mxu2 }
 0x4d3   :  { %v1246_v46 = vmul.f32 %v3010_v11, %v3010_v11  ;;  %v1229_v40 = vsel %vm1052_vm11, %v3010_v11, 0.0 }
 0x4d5   :  { %v1251_v5 = vsel %vm1052_vm11, %v1246_v46, 0.0 }
 0x4da   :  { %v3012_v17 = vpop.f32.mrf.mxu2 }
 0x4db   :  { %v1247_v20 = vmul.f32 %v3012_v17, %v3012_v17  ;;  %v1230_v37 = vsel %vm1052_vm11, %v3012_v17, 0.0 }
 0x4dc   :  { %v1231_v45 = vadd.f32 %v1230_v37, %v1229_v40  ;;  %v1228_v37 = vld [vmem:[%s3316_s4] sm:$0x1]  ;;  %s2179_s4 = smov 32  }
 0x4dd   :  { %v1252_v8 = vsel %vm1052_vm11, %v1247_v20, 0.0 }
 0x4de   :  { %v1253_v24 = vadd.f32 %v1252_v8, %v1251_v5 }
 0x4e2   :  { %v3014_v18 = vpop.f32.mrf.mxu2 }
 0x4e3   :  { %v1248_v38 = vmul.f32 %v3014_v18, %v3014_v18  ;;  %v1232_v23 = vsel %vm1052_vm11, %v3014_v18, 0.0 }
 0x4e4   :  { %v1233_v43 = vadd.f32 %v1232_v23, %v1231_v45 }
 0x4e5   :  { %v1254_v32 = vsel %vm1052_vm11, %v1248_v38, 0.0 }
 0x4e6   :  { %v1255_v14 = vadd.f32 %v1254_v32, %v1253_v24  ;;  %v2136_v32 = vpop.permute.xlu2 %2135 }
 0x4ea   :  { %v3018_v60 = vpop.f32.mrf.mxu2 }
 0x4eb   :  { %v1249_v25 = vmul.f32 %v3018_v60, %v3018_v60  ;;  %v1234_v33 = vsel %vm1052_vm11, %v3018_v60, 0.0 }
 0x4ec   :  { %v1235_v39 = vadd.f32 %v1234_v33, %v1233_v43 }
 0x4ed   :  { %v1256_v36 = vsel %vm1052_vm11, %v1249_v25, 0.0 }
 0x4ee   :  { %v1257_v27 = vadd.f32 %v1256_v36, %v1255_v14  ;;  %v2138_v36 = vunpack.i.h.bf16 %v2136_v32  ;;  %v2137_v14 = vunpack.i.l.bf16 %v2136_v32 }
 0x4f2   :  { %v3038_v2 = vpop.f32.mrf.mxu2 }
 0x4f3   :  { %v1237_v53 = vsel %vm1236_vm14, %v3038_v2, 0.0  ;;  %v1250_v42 = vmul.f32 %v3038_v2, %v3038_v2 }
 0x4f4   :  { %v1238_v56 = vadd.f32 %v1237_v53, %v1235_v39 }
 0x4f5   :  { %v1258_v57 = vsel %vm1236_vm14, %v1250_v42, 0.0  ;;  %vm1644_vm14 = vcmp.le.s32.totalorder %v2672_v16, 8  ;;  %v1373_v16 = vld [vmem:[%s3317_s5 + $0x38] sm:$0xff] }
 0x4f6   :  { %v1239_v48 = vrot.slane %v1238_v56, 4  ;;  %v1259_v35 = vadd.f32 %v1258_v57, %v1257_v27  ;;  %1490 = vmatpush.msra.mxu2 %v1373_v16 }
 0x4f8   :  { %v1240_v41 = vadd.f32 %v1239_v48, %v1238_v56  ;;  %v1260_v58 = vrot.slane %v1259_v35, 4 }
 0x4fa   :  { %v1241_v59 = vrot.slane %v1240_v41, 2  ;;  %v1261_v51 = vadd.f32 %v1260_v58, %v1259_v35 }
 0x4fc   :  { %v1242_v54 = vadd.f32 %v1241_v59, %v1240_v41  ;;  %v1262_v61 = vrot.slane %v1261_v51, 2 }
 0x4fe   :  { %v1243_v0 = vrot.slane %v1242_v54, 1  ;;  %v1263_v31 = vadd.f32 %v1262_v61, %v1261_v51 }
 0x500   :  { %v1244_v47 = vadd.f32 %v1243_v0, %v1242_v54  ;;  %v1264_v29 = vrot.slane %v1263_v31, 1 }
 0x502   :  { %v1245_v1 = vmul.f32 0.03125, %v1244_v47  ;;  %v1265_v55 = vadd.f32 %v1264_v29, %v1263_v31 }
 0x504   :  { %v1266_v3 = vmul.f32 0.03125, %v1265_v55  ;;  %v1267_v4 = vmul.f32 %v1245_v1, %v1245_v1 }
 0x506   :  { %v1268_v6 = vsub.f32 %v1266_v3, %v1267_v4 }
 0x508   :  { %v1269_v7 = vmax.f32 %v1268_v6, 0.0  ;;  %v1355_v6 = vpop.permute.xlu1 %1354 }
 0x50a   :  { %v1270_v49 = vadd.f32 1e-05, %v1269_v7 }
 0x50c   :  { %2161 = vrsqrt.f32 %v1270_v49  ;;  %vm1277_vm6 = vweird.f32 %v1270_v49 }
 0x512   :  { %v2162_v62 = vpop.eup %2161 }
 0x513   :  { %v1272_v9 = vmul.f32 %v2162_v62, %v1270_v49  ;;  %vm1278_vm4 = vweird.f32 %v2162_v62 }
 0x514   :  { %vm1279_vm0 = vmor %vm1277_vm6, %vm1278_vm4  ;;  %vm1461_vm4 = vcmask 392192   ;;  %vm3336_vm6 = vcmask 523264  }
 0x515   :  { %v1273_v10 = vmul.f32 %v2162_v62, %v1272_v9 }
 0x517   :  { %v1274_v12 = vmul.f32 0.5, %v1273_v10 }
 0x519   :  { %v1275_v13 = vsub.f32 1.5, %v1274_v12 }
 0x51b   :  { %v1276_v28 = vmul.f32 %v2162_v62, %v1275_v13 }
 0x51d   :  { %v1280_v20 = vsel %vm1279_vm0, %v2162_v62, %v1276_v28  ;;  %vm3337_vm0 = vmmov %vm3336_vm6 }
 0x51e   :  { %v1281_v46 = vmul.f32 %v1280_v20, %v1227_v44 }
 0x520   :  { %v1282_v38 = vmul.f32 %v1281_v46, %v1245_v1  ;;  %v1285_v40 = vperm.slane %v1281_v46, 0  ;;  %v1359_v46 = vpop.permute.xlu2 %1358 }
 0x522   :  { %v1283_v8 = vsub.f32 %v1228_v37, %v1282_v38  ;;  %v1287_v25 = vmul.f32 %v1285_v40, %v3010_v11  ;;  %v1288_v45 = vmul.f32 %v1285_v40, %v3012_v17  ;;  %v1289_v5 = vmul.f32 %v1285_v40, %v3014_v18  ;;  %v1351_v18 = vpop.permute.xlu0 %1350 }
 0x523   :  { %v1290_v11 = vmul.f32 %v1285_v40, %v3018_v60  ;;  %v1291_v1 = vmul.f32 %v1285_v40, %v3038_v2 }
 0x524   :  { %v1293_v23 = vperm.slane %v1283_v8, 0 }
 0x526   :  { %v1295_v33 = vadd.f32 %v1293_v23, %v1287_v25  ;;  %v1296_v24 = vadd.f32 %v1293_v23, %v1288_v45  ;;  %v1297_v43 = vadd.f32 %v1293_v23, %v1289_v5  ;;  %v1298_v35 = vadd.f32 %v1293_v23, %v1290_v11  ;;  %v1366_v11 = vld [vmem:[%s3317_s5] sm:$0xff] }
 0x527   :  { %v1299_v3 = vadd.f32 %v1293_v23, %v1291_v1 }
 0x528   :  { %vm1300_vm10 = vcmp.gt.f32.partialorder %v1295_v33, 0.0  ;;  %vm1301_vm15 = vcmp.gt.f32.partialorder %v1296_v24, 0.0  ;;  %v1305_v39 = vmul.f32 0.2, %v1295_v33  ;;  %v1306_v53 = vmul.f32 0.2, %v1296_v24 }
 0x529   :  { %vm1302_vm13 = vcmp.gt.f32.partialorder %v1297_v43, 0.0  ;;  %v1307_v42 = vmul.f32 0.2, %v1297_v43  ;;  %v1308_v31 = vmul.f32 0.2, %v1298_v35  ;;  %vm1303_vm9 = vcmp.gt.f32.partialorder %v1298_v35, 0.0 }
 0x52a   :  { %v1310_v27 = vsel %vm1300_vm10, %v1295_v33, %v1305_v39  ;;  %v1311_v56 = vsel %vm1301_vm15, %v1296_v24, %v1306_v53  ;;  %v1309_v10 = vmul.f32 0.2, %v1299_v3  ;;  %vm1304_vm12 = vcmp.gt.f32.partialorder %v1299_v3, 0.0  ;;  %v1372_v53 = vld [vmem:[%s3317_s5 + $0x30] sm:$0xff]  ;;  %vm3338_vm10 = vmmov %vm3337_vm0 }
 0x52b   :  { %v3053_v57 = vmul.f32 %v2137_v14, %v1310_v27  ;;  %v3055_v17 = vmul.f32 %v2138_v36, %v1311_v56  ;;  %v1312_v48 = vsel %vm1302_vm13, %v1297_v43, %v1307_v42  ;;  %v1313_v4 = vsel %vm1303_vm9, %v1298_v35, %v1308_v31  ;;  %1491 = vmatpush.msra.mxu2 %v1372_v53  ;;  %v1371_v42 = vld [vmem:[%s3317_s5 + $0x28] sm:$0xff]  ;;  %v1368_v27 = vld [vmem:[%s3317_s5 + $0x10] sm:$0xff]  ;;  %vm3339_vm15 = vmmov %vm3337_vm0 }
 0x52c   :  { %v3063_v60 = vmul.f32 %v1351_v18, %v1312_v48  ;;  %v3075_v62 = vmul.f32 %v1355_v6, %v1313_v4  ;;  %v1314_v44 = vsel %vm1304_vm12, %v1299_v3, %v1309_v10  ;;  %v1962_v24 = vsel %vm1644_vm14, 1.0, %v2172_v26  ;;  %v1367_v56 = vld [vmem:[%s3317_s5 + $0x8] sm:$0xff]  ;;  %vm3340_vm13 = vmmov %vm3337_vm0 }
 0x52d   :  { %v1427_v41 = vrot.slane %v3053_v57, 3  ;;  %v1428_v58 = vrot.slane %v3055_v17, 3  ;;  %v1403_v59 = vrot.slane %v3053_v57, 2  ;;  %v1404_v51 = vrot.slane %v3055_v17, 2  ;;  %1492 = vmatpush.msra.mxu2 %v1371_v42 }
 0x52e   :  { %v1379_v54 = vrot.slane %v3053_v57, 1  ;;  %v1380_v61 = vrot.slane %v3055_v17, 1  ;;  %v1430_v55 = vrot.slane %v3063_v60, 3  ;;  %v1406_v7 = vrot.slane %v3063_v60, 2 }
 0x52f   :  { %v1429_v0 = vsel %vm364_vm2, %v1427_v41, %v1428_v58  ;;  %v1405_v47 = vsel %vm313_vm5, %v1403_v59, %v1404_v51  ;;  %v1382_v49 = vrot.slane %v3063_v60, 1  ;;  %v1432_v13 = vrot.slane %v3075_v62, 3 }
 0x530   :  { %1436 = vrot.lane.b32.xlu0 %v1429_v0, %s2178_s3  ;;  %v1381_v29 = vsel %vm228_vm1, %v1379_v54, %v1380_v61  ;;  %1412 = vrot.lane.b32.xlu2 %v1405_v47, %s2179_s4  ;;  %v1431_v9 = vsel %vm364_vm2, %v1428_v58, %v1430_v55  ;;  %v1407_v12 = vsel %vm313_vm5, %v1404_v51, %v1406_v7  ;;  %v1408_v28 = vrot.slane %v3075_v62, 2 }
 0x531   :  { %1388 = vrot.lane.b32.xlu1 %v1381_v29, %s2174_s1  ;;  %v1383_v2 = vsel %vm228_vm1, %v1380_v61, %v1382_v49  ;;  %v1384_v20 = vrot.slane %v3075_v62, 1  ;;  %v3086_v37 = vmul.f32 %v1359_v46, %v1314_v44  ;;  %v1433_v38 = vsel %vm364_vm2, %v1430_v55, %v1432_v13 }
 0x532   :  { %v1409_v40 = vsel %vm313_vm5, %v1406_v7, %v1408_v28  ;;  %v1654_v43 = vrot.slane %v1962_v24, 6  ;;  %v1657_v36 = vsel %vm189_vm3, %v1962_v24, %v2979_v52  ;;  %vm3341_vm9 = vcmask 1040384  }
 0x533   :  { %v1385_v8 = vsel %vm228_vm1, %v1382_v49, %v1384_v20  ;;  %v1434_v23 = vrot.slane %v3086_v37, 3  ;;  %v1410_v25 = vrot.slane %v3086_v37, 2  ;;  %v1386_v45 = vrot.slane %v3086_v37, 1 }
 0x534   :  { %v2141_v14 = vpack.i.bf16 %v1657_v36, %v2975_v50  ;;  %v1655_v39 = vsel %vm189_vm3, %v2979_v52, %v1654_v43  ;;  %v1370_v50 = vld [vmem:[%s3317_s5 + $0x20] sm:$0xff]  ;;  %v1369_v52 = vld [vmem:[%s3317_s5 + $0x18] sm:$0xff]  ;;  %vm1515_vm14 = vcmp.lt.s32.totalorder %v2684_v22, 8 }
 0x535   :  { %v1435_v5 = vsel %vm364_vm2, %v1432_v13, %v1434_v23  ;;  %v1411_v32 = vsel %vm313_vm5, %v1408_v28, %v1410_v25  ;;  %v1387_v33 = vsel %vm228_vm1, %v1384_v20, %v1386_v45  ;;  %1493 = vmatpush.msra.mxu2 %v1370_v50 }
 0x537   :  { %1494 = vmatpush.msra.mxu2 %v1369_v52 }
 0x538   :  { %1438 = vrot.lane.b32.xlu0 %v1431_v9, %s2178_s3  ;;  %1414 = vrot.lane.b32.xlu2 %v1407_v12, %s2179_s4 }
 0x539   :  { %1390 = vrot.lane.b32.xlu1 %v1383_v2, %s2174_s1  ;;  %1495 = vmatpush.msra.mxu2 %v1368_v27 }
 0x53b   :  { %1496 = vmatpush.msra.mxu2 %v1367_v56 }
 0x53d   :  { %1497 = vmatpush.msra.mxu2 %v1366_v11 }
 0x540   :  { %1440 = vrot.lane.b32.xlu0 %v1433_v38, %s2178_s3  ;;  %1416 = vrot.lane.b32.xlu2 %v1409_v40, %s2179_s4  ;;  %v1522_v40 = vadd.s32 18, %v2675_v21 }
 0x541   :  { %1392 = vrot.lane.b32.xlu1 %v1385_v8, %s2174_s1 }
 0x542   :  { %vm1524_vm12 = vcmp.eq.s32.totalorder %v2666_v19, %v1522_v40  ;;  %v1685_v40 = vld [vmem:[%s3319_s8 + $0x58] sm:$0xff] }
 0x548   :  { %1442 = vrot.lane.b32.xlu0 %v1435_v5, %s2178_s3  ;;  %1418 = vrot.lane.b32.xlu2 %v1411_v32, %s2179_s4 }
 0x549   :  { %1394 = vrot.lane.b32.xlu1 %v1387_v33, %s2174_s1 }
 0x550   :  { %1444 = vrot.lane.b32.xlu0 %v1434_v23, %s2178_s3  ;;  %1420 = vrot.lane.b32.xlu2 %v1410_v25, %s2179_s4 }
 0x551   :  { %1396 = vrot.lane.b32.xlu1 %v1386_v45, %s2174_s1 }
 0x558   :  { %1668 = vperm.xlu2 %2133, %v1655_v39  }
 0x559   :  { %2142 = vperm.xlu1 %2140, %v2141_v14  }
 0x58a   :  { %v1413_v18 = vpop.permute.xlu2 %1412 }
 0x592   :  { %v1415_v59 = vpop.permute.xlu2 %1414 }
 0x59a   :  { %v1417_v29 = vpop.permute.xlu2 %1416 }
 0x5a2   :  { %v1437_v48 = vpop.permute.xlu0 %1436  ;;  %v1419_v6 = vpop.permute.xlu2 %1418 }
 0x5a3   :  { %v1389_v35 = vpop.permute.xlu1 %1388 }
 0x5a4   :  { %v1451_v41 = vsel %vm1052_vm11, %v3053_v57, %v1389_v35 }
 0x5a5   :  { %v1456_v58 = vsel %vm1072_vm8, %v1451_v41, %v1413_v18 }
 0x5a6   :  { %v1462_v51 = vsel %vm1461_vm4, %v1456_v58, %v1437_v48 }
 0x5a7   :  { %1952 = vmatmul.msk.f32.vlgmr.msra.gmra.mxu2 %vm3336_vm6, %v1462_v51  ;;  %vm3342_vm6 = vcmp.eq.s32.totalorder %v2666_v19, %v2690_v30 }
 0x5aa   :  { %v1439_v54 = vpop.permute.xlu0 %1438 }
 0x5ab   :  { %v1391_v61 = vpop.permute.xlu1 %1390 }
 0x5ac   :  { %v1452_v0 = vsel %vm1052_vm11, %v3055_v17, %v1391_v61 }
 0x5ad   :  { %v1457_v31 = vsel %vm1072_vm8, %v1452_v0, %v1415_v59 }
 0x5ae   :  { %v1463_v47 = vsel %vm1461_vm4, %v1457_v31, %v1439_v54 }
 0x5af   :  { %1953 = vmatmul.msk.f32.gmra.mxu2 %vm3337_vm0, %v1463_v47  ;;  %vm1519_vm0 = vmand %vm1515_vm14, %vm3342_vm6  ;;  %vm1771_vm6 = vcmp.lt.s32.totalorder %v2664_v15, 4 }
 0x5b0   :  { %v1521_v63 = vsel %vm1519_vm0, 1.0, %v2172_v26 }
 0x5b2   :  { %v1441_v57 = vpop.permute.xlu0 %1440 }
 0x5b3   :  { %v1393_v1 = vpop.permute.xlu1 %1392 }
 0x5b4   :  { %v1453_v55 = vsel %vm1052_vm11, %v3063_v60, %v1393_v1  ;;  %v1421_v60 = vpop.permute.xlu2 %1420 }
 0x5b5   :  { %v1458_v3 = vsel %vm1072_vm8, %v1453_v55, %v1417_v29 }
 0x5b6   :  { %v1464_v4 = vsel %vm1461_vm4, %v1458_v3, %v1441_v57 }
 0x5b7   :  { %1954 = vmatmul.msk.f32.gmra.mxu2 %vm3338_vm10, %v1464_v4 }
 0x5ba   :  { %v1443_v17 = vpop.permute.xlu0 %1442 }
 0x5bb   :  { %v1395_v7 = vpop.permute.xlu1 %1394 }
 0x5bc   :  { %v1454_v49 = vsel %vm1052_vm11, %v3075_v62, %v1395_v7 }
 0x5bd   :  { %v1459_v9 = vsel %vm1072_vm8, %v1454_v49, %v1419_v6 }
 0x5be   :  { %v1465_v10 = vsel %vm1461_vm4, %v1459_v9, %v1443_v17  ;;  %v1575_v9 = vld [vmem:[%s3318_s6] sm:$0x1] }
 0x5bf   :  { %1955 = vmatmul.msk.f32.gmra.mxu2 %vm3339_vm15, %v1465_v10  ;;  %vm1580_vm15 = vcmask 257024  }
 0x5c2   :  { %v1445_v13 = vpop.permute.xlu0 %1444 }
 0x5c3   :  { %v1397_v12 = vpop.permute.xlu1 %1396 }
 0x5c4   :  { %v1455_v2 = vsel %vm1052_vm11, %v3086_v37, %v1397_v12  ;;  %vm1526_vm11 = vmand %vm634_vm7, %vm1524_vm12  ;;  %v1523_v37 = vadd.s32 18, %v2690_v30  ;;  %v1689_v12 = vld [vmem:[%s3319_s8 + $0x78] sm:$0xff] }
 0x5c5   :  { %v1460_v44 = vsel %vm1072_vm8, %v1455_v2, %v1421_v60  ;;  %v1528_v23 = vsel %vm1526_vm11, 1.0, %v2172_v26  ;;  %v1688_v60 = vld [vmem:[%s3319_s8 + $0x70] sm:$0xff]  ;;  %1745 = vmatpush.msrb.mxu0 %v1689_v12  ;;  %1966 = vmatpush.msrb.mxu1 %v1689_v12 }
 0x5c6   :  { %v1466_v28 = vsel %vm1461_vm4, %v1460_v44, %v1445_v13  ;;  %vm1537_vm4 = vcmask 269312   ;;  %vm1525_vm10 = vcmp.eq.s32.totalorder %v2666_v19, %v1523_v37  ;;  %v1532_v21 = vrot.slane %v1528_v23, 6  ;;  %v1687_v44 = vld [vmem:[%s3319_s8 + $0x68] sm:$0xff] }
 0x5c7   :  { %1956 = vmatmul.msk.f32.gmra.mxu2 %vm3340_vm13, %v1466_v28  ;;  %vm1527_vm7 = vmand %vm1515_vm14, %vm1525_vm10  ;;  %v1576_v28 = vld [vmem:[%s3320_s7] sm:$0x1]  ;;  %1746 = vmatpush.msrb.mxu0 %v1688_v60 }
 0x5c8   :  { %v1536_v22 = vsel %vm189_vm3, %v1521_v63, %v1532_v21  ;;  %v1529_v25 = vsel %vm1527_vm7, 1.0, %v2172_v26  ;;  %1967 = vmatpush.msrb.mxu1 %v1688_v60  ;;  %v1684_v63 = vld [vmem:[%s3319_s8 + $0x50] sm:$0xff] }
 0x5c9   :  { %v1533_v45 = vrot.slane %v1529_v25, 6  ;;  %1747 = vmatpush.msrb.mxu0 %v1687_v44 }
 0x5ca   :  { %1968 = vmatpush.msrb.mxu1 %v1687_v44 }
 0x5cb   :  { %v1534_v5 = vsel %vm189_vm3, %v1532_v21, %v1533_v45 }
 0x62a   :  { %v1499_v20 = vpop.f32.mrf.mxu2 }
 0x632   :  { %v1502_v62 = vpop.f32.mrf.mxu2 }
 0x63a   :  { %v1505_v46 = vpop.f32.mrf.mxu2 }
 0x642   :  { %v1508_v38 = vpop.f32.mrf.mxu2 }
 0x64a   :  { %v1511_v8 = vpop.f32.mrf.mxu2 }
 0x64b   :  { %1957 = vmatpush.msk.msra.mxu3 %vm3341_vm9, %v1511_v8 }
 0x64d   :  { %1561 = vmatpush.msra.mxu3 %v1508_v38 }
 0x64f   :  { %1562 = vmatpush.msra.mxu3 %v1505_v46  ;;  %v1686_v46 = vld [vmem:[%s3319_s8 + $0x60] sm:$0xff] }
 0x650   :  { %1748 = vmatpush.msrb.mxu0 %v1686_v46  ;;  %1969 = vmatpush.msrb.mxu1 %v1686_v46 }
 0x651   :  { %1563 = vmatpush.msra.mxu3 %v1502_v62 }
 0x652   :  { %1749 = vmatpush.msrb.mxu0 %v1685_v40  ;;  %1970 = vmatpush.msrb.mxu1 %v1685_v40 }
 0x653   :  { %1564 = vmatpush.msra.mxu3 %v1499_v20 }
 0x654   :  { %1958 = vmatmul.msk.f32.vlgmr.msra.gmra.mxu3 %vm1537_vm4, %v2966_v34  ;;  %1750 = vmatpush.msrb.mxu0 %v1684_v63 }
 0x655   :  { %1971 = vmatpush.msrb.mxu1 %v1684_v63 }
 0x65c   :  { %1959 = vmatmul.msk.f32.gmra.mxu3 %vm1537_vm4, %v1536_v22  ;;  %v2143_v22 = vpop.permute.xlu1 %2142 }
 0x664   :  { %1960 = vmatmul.msk.f32.gmra.mxu3 %vm1537_vm4, %v1534_v5 }
 0x6d7   :  { %v3179_v30 = vpop.f32.mrf.mxu3 }
 0x6d8   :  { %v1590_v33 = vmul.f32 %v3179_v30, %v3179_v30  ;;  %v1577_v43 = vsel %vm1072_vm8, %v3179_v30, 0.0 }
 0x6da   :  { %v1593_v16 = vsel %vm1072_vm8, %v1590_v33, 0.0 }
 0x6df   :  { %v3181_v32 = vpop.f32.mrf.mxu3 }
 0x6e0   :  { %v1591_v34 = vmul.f32 %v3181_v32, %v3181_v32  ;;  %v1578_v24 = vsel %vm1072_vm8, %v3181_v32, 0.0 }
 0x6e1   :  { %v1579_v14 = vadd.f32 %v1578_v24, %v1577_v43  ;;  %v2145_v24 = vunpack.i.h.bf16 %v2143_v22 }
 0x6e2   :  { %v1594_v36 = vsel %vm1072_vm8, %v1591_v34, 0.0  ;;  %v2144_v34 = vunpack.i.l.bf16 %v2143_v22 }
 0x6e3   :  { %v1595_v50 = vadd.f32 %v1594_v36, %v1593_v16  ;;  %v1669_v36 = vpop.permute.xlu2 %1668 }
 0x6e7   :  { %v1572_v39 = vpop.f32.mrf.mxu3 }
 0x6e8   :  { %v1581_v53 = vsel %vm1580_vm15, %v1572_v39, 0.0  ;;  %v1592_v42 = vmul.f32 %v1572_v39, %v1572_v39 }
 0x6e9   :  { %v1582_v52 = vadd.f32 %v1581_v53, %v1579_v14 }
 0x6ea   :  { %v1596_v27 = vsel %vm1580_vm15, %v1592_v42, 0.0  ;;  %vm3346_vm15 = vcmask 1040384  }
 0x6eb   :  { %v1583_v56 = vrot.slane %v1582_v52, 4  ;;  %v1597_v11 = vadd.f32 %v1596_v27, %v1595_v50 }
 0x6ed   :  { %v1584_v18 = vadd.f32 %v1583_v56, %v1582_v52  ;;  %v1598_v48 = vrot.slane %v1597_v11, 4 }
 0x6ef   :  { %v1585_v35 = vrot.slane %v1584_v18, 2  ;;  %v1599_v41 = vadd.f32 %v1598_v48, %v1597_v11 }
 0x6f1   :  { %v1586_v58 = vadd.f32 %v1585_v35, %v1584_v18  ;;  %v1600_v59 = vrot.slane %v1599_v41, 2 }
 0x6f3   :  { %v1587_v51 = vrot.slane %v1586_v58, 1  ;;  %v1601_v54 = vadd.f32 %v1600_v59, %v1599_v41 }
 0x6f5   :  { %v1588_v61 = vadd.f32 %v1587_v51, %v1586_v58  ;;  %v1602_v0 = vrot.slane %v1601_v54, 1 }
 0x6f7   :  { %v1589_v31 = vmul.f32 0.0625, %v1588_v61  ;;  %v1603_v47 = vadd.f32 %v1602_v0, %v1601_v54 }
 0x6f9   :  { %v1604_v29 = vmul.f32 0.0625, %v1603_v47  ;;  %v1605_v57 = vmul.f32 %v1589_v31, %v1589_v31 }
 0x6fb   :  { %v1606_v1 = vsub.f32 %v1604_v29, %v1605_v57  ;;  %v1683_v57 = vld [vmem:[%s3319_s8 + $0x48] sm:$0xff] }
 0x6fc   :  { %1751 = vmatpush.msrb.mxu0 %v1683_v57  ;;  %1972 = vmatpush.msrb.mxu1 %v1683_v57 }
 0x6fd   :  { %v1607_v55 = vmax.f32 %v1606_v1, 0.0  ;;  %v1682_v1 = vld [vmem:[%s3319_s8 + $0x40] sm:$0xff] }
 0x6fe   :  { %1752 = vmatpush.msrb.mxu0 %v1682_v1  ;;  %1973 = vmatpush.msrb.mxu1 %v1682_v1 }
 0x6ff   :  { %v1608_v3 = vadd.f32 1e-05, %v1607_v55  ;;  %v1681_v55 = vld [vmem:[%s3319_s8 + $0x38] sm:$0xff] }
 0x700   :  { %1753 = vmatpush.msrb.mxu0 %v1681_v55  ;;  %1974 = vmatpush.msrb.mxu1 %v1681_v55 }
 0x701   :  { %2163 = vrsqrt.f32 %v1608_v3  ;;  %vm1615_vm13 = vweird.f32 %v1608_v3 }
 0x707   :  { %v2164_v4 = vpop.eup %2163 }
 0x708   :  { %v1610_v6 = vmul.f32 %v2164_v4, %v1608_v3  ;;  %vm1616_vm3 = vweird.f32 %v2164_v4  ;;  %v1680_v3 = vld [vmem:[%s3319_s8 + $0x30] sm:$0xff] }
 0x709   :  { %vm1617_vm9 = vmor %vm1615_vm13, %vm1616_vm3  ;;  %1754 = vmatpush.msrb.mxu0 %v1680_v3  ;;  %1975 = vmatpush.msrb.mxu1 %v1680_v3  ;;  %vm1783_vm3 = vcmask 1043456   ;;  %vm1785_vm13 = vcmask 138240   ;;  %v1812_v3 = vld [vmem:[%s3321_s9] sm:$0x1] }
 0x70a   :  { %v1611_v17 = vmul.f32 %v2164_v4, %v1610_v6  ;;  %v1678_v6 = vld [vmem:[%s3319_s8 + $0x20] sm:$0xff] }
 0x70c   :  { %v1612_v7 = vmul.f32 0.5, %v1611_v17  ;;  %v1677_v17 = vld [vmem:[%s3319_s8 + $0x18] sm:$0xff] }
 0x70e   :  { %v1613_v49 = vsub.f32 1.5, %v1612_v7  ;;  %v1676_v7 = vld [vmem:[%s3319_s8 + $0x10] sm:$0xff] }
 0x710   :  { %v1614_v10 = vmul.f32 %v2164_v4, %v1613_v49  ;;  %v1675_v49 = vld [vmem:[%s3319_s8 + $0x8] sm:$0xff] }
 0x712   :  { %v1618_v2 = vsel %vm1617_vm9, %v2164_v4, %v1614_v10  ;;  %v1679_v4 = vld [vmem:[%s3319_s8 + $0x28] sm:$0xff] }
 0x713   :  { %v1619_v13 = vmul.f32 %v1618_v2, %v1575_v9  ;;  %1755 = vmatpush.msrb.mxu0 %v1679_v4  ;;  %1976 = vmatpush.msrb.mxu1 %v1679_v4  ;;  %v1674_v9 = vld [vmem:[%s3319_s8] sm:$0xff] }
 0x715   :  { %v1620_v20 = vmul.f32 %v1619_v13, %v1589_v31  ;;  %v1623_v62 = vperm.slane %v1619_v13, 0  ;;  %1756 = vmatpush.msrb.mxu0 %v1678_v6  ;;  %1977 = vmatpush.msrb.mxu1 %v1678_v6 }
 0x717   :  { %v1621_v38 = vsub.f32 %v1576_v28, %v1620_v20  ;;  %v1625_v8 = vmul.f32 %v1623_v62, %v3179_v30  ;;  %v1626_v37 = vmul.f32 %v1623_v62, %v3181_v32  ;;  %v1627_v23 = vmul.f32 %v1623_v62, %v1572_v39  ;;  %1757 = vmatpush.msrb.mxu0 %v1677_v17 }
 0x718   :  { %1978 = vmatpush.msrb.mxu1 %v1677_v17 }
 0x719   :  { %v1629_v21 = vperm.slane %v1621_v38, 0  ;;  %1758 = vmatpush.msrb.mxu0 %v1676_v7 }
 0x71a   :  { %1979 = vmatpush.msrb.mxu1 %v1676_v7  ;;  %v1813_v7 = vld [vmem:[%s3322_s10] sm:$0x1] }
 0x71b   :  { %v1631_v25 = vadd.f32 %v1629_v21, %v1625_v8  ;;  %v1632_v45 = vadd.f32 %v1629_v21, %v1626_v37  ;;  %v1633_v5 = vadd.f32 %v1629_v21, %v1627_v23  ;;  %1759 = vmatpush.msrb.mxu0 %v1675_v49 }
 0x71c   :  { %1980 = vmatpush.msrb.mxu1 %v1675_v49 }
 0x71d   :  { %vm1634_vm12 = vcmp.gt.f32.partialorder %v1631_v25, 0.0  ;;  %vm1635_vm11 = vcmp.gt.f32.partialorder %v1632_v45, 0.0  ;;  %vm1636_vm14 = vcmp.gt.f32.partialorder %v1633_v5, 0.0  ;;  %v1637_v30 = vmul.f32 0.2, %v1631_v25  ;;  %1760 = vmatpush.msrb.mxu0 %v1674_v9 }
 0x71e   :  { %v1638_v32 = vmul.f32 0.2, %v1632_v45  ;;  %v1639_v33 = vmul.f32 0.2, %v1633_v5  ;;  %1981 = vmatpush.msrb.mxu1 %v1674_v9 }
 0x71f   :  { %v1640_v43 = vsel %vm1634_vm12, %v1631_v25, %v1637_v30  ;;  %v1772_v30 = vmul.u32 2, %v2664_v15 }
 0x720   :  { %v1641_v14 = vsel %vm1635_vm11, %v1632_v45, %v1638_v32  ;;  %v1642_v39 = vsel %vm1636_vm14, %v1633_v5, %v1639_v33  ;;  %v3219_v16 = vmul.f32 %v2144_v34, %v1640_v43 }
 0x721   :  { %v3221_v53 = vmul.f32 %v1669_v36, %v1642_v39  ;;  %v3223_v42 = vmul.f32 %v2145_v24, %v1641_v14  ;;  %v1776_v34 = vadd.s32 10, %v1772_v30  ;;  %vm1773_vm7 = vcmp.eq.s32.totalorder %v2666_v19, %v1772_v30 }
 0x722   :  { %v1721_v50 = vrot.slane %v3219_v16, 3  ;;  %v1707_v52 = vrot.slane %v3219_v16, 2  ;;  %v1693_v27 = vrot.slane %v3219_v16, 1 }
 0x723   :  { %v1722_v56 = vrot.slane %v3223_v42, 3  ;;  %v1724_v11 = vrot.slane %v3221_v53, 3  ;;  %v1708_v18 = vrot.slane %v3223_v42, 2  ;;  %v1710_v48 = vrot.slane %v3221_v53, 2 }
 0x724   :  { %v1694_v35 = vrot.slane %v3223_v42, 1  ;;  %v1696_v41 = vrot.slane %v3221_v53, 1  ;;  %vm1777_vm0 = vcmp.eq.s32.totalorder %v2666_v19, %v1776_v34 }
 0x725   :  { %v1723_v58 = vsel %vm364_vm2, %v1721_v50, %v1722_v56  ;;  %v1709_v59 = vsel %vm313_vm5, %v1707_v52, %v1708_v18  ;;  %v1725_v31 = vsel %vm364_vm2, %v1722_v56, %v1724_v11  ;;  %v1711_v47 = vsel %vm313_vm5, %v1708_v18, %v1710_v48  ;;  %vm1778_vm10 = vmand %vm1771_vm6, %vm1777_vm0 }
 0x726   :  { %v2156_v51 = vpack.i.bf16 %v1724_v11, %v1723_v58  ;;  %v2151_v54 = vpack.i.bf16 %v1710_v48, %v1709_v59  ;;  %v1695_v61 = vsel %vm228_vm1, %v1693_v27, %v1694_v35  ;;  %v1697_v29 = vsel %vm228_vm1, %v1694_v35, %v1696_v41 }
 0x727   :  { %v2146_v0 = vpack.i.bf16 %v1696_v41, %v1695_v61  ;;  %vm1741_vm1 = vcmask 785408   ;;  %vm3343_vm2 = vcmask 523264   ;;  %v1779_v24 = vsel %vm1778_vm10, 1.0, %v2172_v26 }
 0x728   :  { %2157 = vrot.lane.b32.xlu2 %v2156_v51, %s2180_s29  ;;  %2152 = vrot.lane.b32.xlu1 %v2151_v54, %s2171_s0  ;;  %vm3344_vm5 = vmmov %vm3343_vm2  ;;  %v1781_v43 = vrot.slane %v1779_v24, 4 }
 0x729   :  { %2147 = vrot.lane.b32.xlu0 %v2146_v0, %s2179_s4  ;;  %vm3345_vm4 = vmmov %vm3343_vm2 }
 0x72a   :  { %vm3347_vm9 = vmmov %vm3343_vm2 }
 0x72b   :  { %vm3348_vm12 = vmmov %vm3343_vm2 }
 0x730   :  { %1728 = vrot.lane.b32.xlu2 %v1725_v31, %s2180_s29  ;;  %1714 = vrot.lane.b32.xlu1 %v1711_v47, %s2171_s0 }
 0x731   :  { %1700 = vrot.lane.b32.xlu0 %v1697_v29, %s2179_s4 }
 0x782   :  { %v2158_v12 = vpop.permute.xlu2 %2157 }
 0x783   :  { %v2160_v20 = vunpack.i.h.bf16 %v2158_v12  ;;  %v2159_v62 = vunpack.i.l.bf16 %v2158_v12 }
 0x78a   :  { %v1729_v45 = vpop.permute.xlu2 %1728 }
 0x79a   :  { %v2153_v10 = vpop.permute.xlu1 %2152 }
 0x79b   :  { %v2155_v60 = vunpack.i.h.bf16 %v2153_v10  ;;  %v2154_v2 = vunpack.i.l.bf16 %v2153_v10  ;;  %v2148_v13 = vpop.permute.xlu0 %2147  ;;  %v1859_v10 = vld [vmem:[%s3323_s11] sm:$0xf] }
 0x79c   :  { %v2150_v44 = vunpack.i.h.bf16 %v2148_v13  ;;  %v2149_v28 = vunpack.i.l.bf16 %v2148_v13  ;;  %v1861_v13 = vrot.slane %v1859_v10, 4 }
 0x79e   :  { %v1735_v46 = vsel %vm1072_vm8, %v3219_v16, %v2149_v28  ;;  %v1737_v38 = vsel %vm1072_vm8, %v3221_v53, %v2150_v44 }
 0x79f   :  { %v1738_v40 = vsel %vm3343_vm2, %v1735_v46, %v2154_v2  ;;  %v1740_v8 = vsel %vm3344_vm5, %v1737_v38, %v2155_v60  ;;  %vm1876_vm5 = vcmask 523268  }
 0x7a0   :  { %v1742_v37 = vsel %vm1741_vm1, %v1738_v40, %v2159_v62  ;;  %v1744_v23 = vsel %vm1741_vm1, %v1740_v8, %v2160_v20  ;;  %v1863_v20 = vsel %vm1783_vm3, %v1859_v10, %v1861_v13 }
 0x7a1   :  { %1761 = vmatmul.f32.vlgmr.msrb.gmra.mxu0 %v1742_v37  ;;  %1767 = vmatmul.f32.vlgmr.msrb.gmra.mxu1 %v1744_v23 }
 0x7a2   :  { %v1715_v21 = vpop.permute.xlu1 %1714 }
 0x7a3   :  { %v1701_v63 = vpop.permute.xlu0 %1700 }
 0x7a4   :  { %v1736_v22 = vsel %vm1072_vm8, %v3223_v42, %v1701_v63  ;;  %vm1774_vm8 = vmand %vm1771_vm6, %vm1773_vm7  ;;  %vm1910_vm7 = vcmask 1024  }
 0x7a5   :  { %v1739_v25 = vsel %vm3345_vm4, %v1736_v22, %v1715_v21  ;;  %v1775_v36 = vsel %vm1774_vm8, 1.0, %v2172_v26  ;;  %vm1865_vm4 = vcmask 519168   ;;  %vm3349_vm6 = vmmov %vm3346_vm15 }
 0x7a6   :  { %v1743_v5 = vsel %vm1741_vm1, %v1739_v25, %v1729_v45  ;;  %v1784_v15 = vsel %vm1783_vm3, %v1775_v36, %v1781_v43 }
 0x7a9   :  { %1764 = vmatmul.f32.gmra.mxu0 %v1743_v5 }
 0x81e   :  { %v1762_v32 = vpop.f32.mrf.mxu0  ;;  %v1768_v33 = vpop.f32.mrf.mxu1 }
 0x81f   :  { %1963 = vmatpush.msk.msra.mxu1 %vm3346_vm15, %v1768_v33 }
 0x826   :  { %v1765_v14 = vpop.f32.mrf.mxu0 }
 0x827   :  { %1806 = vmatpush.msra.mxu1 %v1765_v14 }
 0x829   :  { %1807 = vmatpush.msra.mxu1 %v1762_v32 }
 0x82a   :  { %1964 = vmatmul.msk.f32.vlgmr.msra.gmra.mxu1 %vm1785_vm13, %v1784_v15 }
 0x8a7   :  { %v1809_v39 = vpop.f32.mrf.mxu1 }
 0x8a8   :  { %v1814_v16 = vsel %vm3347_vm9, %v1809_v39, 0.0  ;;  %v1822_v19 = vmul.f32 %v1809_v39, %v1809_v39 }
 0x8a9   :  { %v1815_v53 = vrot.slane %v1814_v16, 4 }
 0x8aa   :  { %v1823_v42 = vsel %vm3348_vm12, %v1822_v19, 0.0 }
 0x8ab   :  { %v1816_v50 = vadd.f32 %v1815_v53, %v1814_v16  ;;  %v1824_v52 = vrot.slane %v1823_v42, 4 }
 0x8ad   :  { %v1817_v27 = vrot.slane %v1816_v50, 2  ;;  %v1825_v56 = vadd.f32 %v1824_v52, %v1823_v42 }
 0x8af   :  { %v1818_v26 = vadd.f32 %v1817_v27, %v1816_v50  ;;  %v1826_v11 = vrot.slane %v1825_v56, 2 }
 0x8b1   :  { %v1819_v18 = vrot.slane %v1818_v26, 1  ;;  %v1827_v48 = vadd.f32 %v1826_v11, %v1825_v56 }
 0x8b3   :  { %v1820_v35 = vadd.f32 %v1819_v18, %v1818_v26  ;;  %v1828_v41 = vrot.slane %v1827_v48, 1 }
 0x8b5   :  { %v1821_v58 = vmul.f32 0.125, %v1820_v35  ;;  %v1829_v59 = vadd.f32 %v1828_v41, %v1827_v48 }
 0x8b7   :  { %v1830_v51 = vmul.f32 0.125, %v1829_v59  ;;  %v1831_v54 = vmul.f32 %v1821_v58, %v1821_v58 }
 0x8b9   :  { %v1832_v61 = vsub.f32 %v1830_v51, %v1831_v54 }
 0x8bb   :  { %v1833_v0 = vmax.f32 %v1832_v61, 0.0 }
 0x8bd   :  { %v1834_v31 = vadd.f32 1e-05, %v1833_v0 }
 0x8bf   :  { %2165 = vrsqrt.f32 %v1834_v31  ;;  %vm1841_vm14 = vweird.f32 %v1834_v31 }
 0x8c5   :  { %v2166_v47 = vpop.eup %2165 }
 0x8c6   :  { %v1836_v29 = vmul.f32 %v2166_v47, %v1834_v31  ;;  %vm1842_vm11 = vweird.f32 %v2166_v47 }
 0x8c7   :  { %vm1843_vm1 = vmor %vm1841_vm14, %vm1842_vm11 }
 0x8c8   :  { %v1837_v57 = vmul.f32 %v2166_v47, %v1836_v29 }
 0x8ca   :  { %v1838_v1 = vmul.f32 0.5, %v1837_v57 }
 0x8cc   :  { %v1839_v55 = vsub.f32 1.5, %v1838_v1 }
 0x8ce   :  { %v1840_v4 = vmul.f32 %v2166_v47, %v1839_v55 }
 0x8d0   :  { %v1844_v6 = vsel %vm1843_vm1, %v2166_v47, %v1840_v4 }
 0x8d1   :  { %v1845_v17 = vmul.f32 %v1844_v6, %v1812_v3 }
 0x8d3   :  { %v1846_v49 = vmul.f32 %v1845_v17, %v1821_v58  ;;  %v1849_v9 = vperm.slane %v1845_v17, 0 }
 0x8d5   :  { %v1847_v12 = vsub.f32 %v1813_v7, %v1846_v49  ;;  %v1851_v60 = vmul.f32 %v1849_v9, %v1809_v39 }
 0x8d7   :  { %v1853_v2 = vperm.slane %v1847_v12, 0 }
 0x8d9   :  { %v1855_v44 = vadd.f32 %v1853_v2, %v1851_v60 }
 0x8db   :  { %vm1856_vm2 = vcmp.gt.f32.partialorder %v1855_v44, 0.0  ;;  %v1857_v28 = vmul.f32 0.2, %v1855_v44 }
 0x8dd   :  { %v1858_v62 = vsel %vm1856_vm2, %v1855_v44, %v1857_v28 }
 0x8de   :  { %v1864_v46 = vmul.f32 %v1863_v20, %v1858_v62 }
 0x8e0   :  { %v1877_v38 = vsel %vm1876_vm5, %v1864_v46, 0.0  ;;  %v1866_v40 = vsel %vm1865_vm4, %v1864_v46, 0.0 }
 0x8e1   :  { %1878 = vadd.xlane.f32.xlu0 %v1877_v38  ;;  %1867 = vadd.xlane.f32.xlu1 %v1866_v40 }
 0x954   :  { %v1879_v8 = vpop.xlane.xlu0 %1878  ;;  %v1868_v37 = vpop.xlane.xlu1 %1867 }
 0x955   :  { %v1881_v23 = vrot.slane %v1879_v8, 4  ;;  %v1869_v21 = vsel %vm1783_vm3, %v1868_v37, 0.0 }
 0x956   :  { %v1870_v63 = vrot.slane %v1869_v21, 4 }
 0x957   :  { %v1883_v22 = vsel %vm1783_vm3, %v1881_v23, 0.0 }
 0x958   :  { %v1884_v25 = vrot.slane %v1883_v22, 4  ;;  %v1871_v45 = vadd.f32 %v1870_v63, %v1869_v21 }
 0x95a   :  { %v1885_v5 = vadd.f32 %v1884_v25, %v1883_v22  ;;  %v1872_v30 = vrot.slane %v1871_v45, 2 }
 0x95c   :  { %v1886_v34 = vrot.slane %v1885_v5, 2  ;;  %v1873_v32 = vadd.f32 %v1872_v30, %v1871_v45 }
 0x95e   :  { %v1887_v33 = vadd.f32 %v1886_v34, %v1885_v5  ;;  %v1874_v24 = vrot.slane %v1873_v32, 1 }
 0x960   :  { %v1888_v43 = vrot.slane %v1887_v33, 1  ;;  %v1875_v14 = vadd.f32 %v1874_v24, %v1873_v32 }
 0x962   :  { %v1889_v36 = vadd.f32 %v1888_v43, %v1887_v33 }
 0x964   :  { %v1890_v15 = vsel %vm3349_vm6, %v1875_v14, %v1889_v36 }
 0x965   :  { %v1965_v39 = vmul.f32 -1.442695, %v1890_v15 }
 0x967   :  { %2167 = vpow2.f32 %v1965_v39 }
 0x96d   :  { %v2168_v16 = vpop.eup %2167 }
 0x96e   :  { %v1894_v19 = vadd.f32 1.0, %v2168_v16 }
 0x970   :  { %2169 = vrcp.f32 %v1894_v19  ;;  %v1906_v52 = vand.u32 2147483648, %v1894_v19  ;;  %v1904_v56 = vand.u32 2147483647, %v1894_v19  ;;  %vm1900_vm10 = vweird.f32 %v1894_v19 }
 0x972   :  { %v1907_v11 = vor.u32 1.1754944e-38, %v1906_v52  ;;  %vm1905_vm8 = vcmp.eq.f32.partialorder %v1904_v56, 8.507059e+37 }
 0x976   :  { %v2170_v53 = vpop.eup %2169 }
 0x977   :  { %v1896_v42 = vmul.f32 %v2170_v53, %v1894_v19  ;;  %vm1901_vm0 = vweird.f32 %v2170_v53 }
 0x978   :  { %vm1902_vm15 = vmor %vm1900_vm10, %vm1901_vm0 }
 0x979   :  { %v1897_v50 = vsub.f32 1.0, %v1896_v42 }
 0x97b   :  { %v1898_v27 = vmul.f32 %v2170_v53, %v1897_v50 }
 0x97d   :  { %v1899_v26 = vadd.f32 %v2170_v53, %v1898_v27 }
 0x97f   :  { %v1903_v18 = vsel %vm1902_vm15, %v2170_v53, %v1899_v26 }
 0x980   :  { %v1908_v48 = vsel %vm1905_vm8, %v1907_v11, %v1903_v18 }
 0x981   :  { %1911 = vst.msk [vmem:[%s3324_s12] sm:$0x3] %vm1910_vm7, %v1908_v48 }

</bundles_post_ra>
